<compile_context>
chip_gen: v7x
topology: tpu7x:2x2x1
jax: 0.10.0
libtpu: 0.0.40
codegen_flags: <defaults>
</compile_context>

<pallas_src>
import functools
import math

import jax
import jax.numpy as jnp
from jax.experimental import pallas as pl
from jax.experimental.pallas import tpu as pltpu

_PACK_LANES = 128   # lane width of the packed parameter buffer
_SUBLANE = 8


def _r8(n):
    return ((n + _SUBLANE - 1) // _SUBLANE) * _SUBLANE


def _param_layout(data_dim, dmodel, dhid, nclasses, nlayers):
    """Static (row_offset, rows, cols) for every tensor in the packed buffer.

    Every entry starts on an 8-row (sublane) boundary so in-kernel static row
    slices stay sublane-aligned.
    """
    entries = [("emb_w", data_dim, dmodel), ("emb_b", 1, dmodel)]
    for l in range(nlayers):
        entries += [
            (f"q_w{l}", dmodel, dmodel), (f"q_b{l}", 1, dmodel),
            (f"k_w{l}", dmodel, dmodel), (f"k_b{l}", 1, dmodel),
            (f"v_w{l}", dmodel, dmodel), (f"v_b{l}", 1, dmodel),
            (f"o_w{l}", dmodel, dmodel), (f"o_b{l}", 1, dmodel),
            (f"ff1_w{l}", dmodel, dhid), (f"ff1_b{l}", 1, dhid),
            (f"ff2_w{l}", dhid, dmodel), (f"ff2_b{l}", 1, dmodel),
            (f"ln1_g{l}", 1, dmodel), (f"ln1_b{l}", 1, dmodel),
            (f"ln2_g{l}", 1, dmodel), (f"ln2_b{l}", 1, dmodel),
        ]
    entries += [("cls_w", dmodel, nclasses), ("cls_b", 1, nclasses)]
    layout, off = {}, 0
    for name, rows, cols in entries:
        layout[name] = (off, rows, cols)
        off += _r8(rows)
    return layout, off


def pack_params(params, nhead):
    """One-time repack of all weights into a single (R, 128) f32 buffer.

    * positional + embed Linear folded into one (data_dim, D) matmul.
    * in_proj split into q/k/v pieces (activations are never lane-sliced at
      offsets 32/64 inside the kernel).
    * 1/sqrt(dh) attention scale folded into q_w / q_b.
    Call once outside the jitted forward; the kernel then needs a single
    HBM->VMEM DMA for all parameters.
    """
    dmodel = params["embed_w"].shape[1]
    data_dim = params["embed_w"].shape[0] + 1
    dhid = params["layers"][0]["ff1_w"].shape[1]
    nclasses = params["cls_w"].shape[1]
    nlayers = len(params["layers"])
    dh = dmodel // nhead
    scale = 1.0 / math.sqrt(dh)
    assert max(dmodel, dhid, nclasses, data_dim) <= _PACK_LANES

    layout, total_rows = _param_layout(data_dim, dmodel, dhid, nclasses, nlayers)
    buf = jnp.zeros((total_rows, _PACK_LANES), jnp.float32)

    def put(buf, name, arr):
        off, rows, cols = layout[name]
        assert arr.shape == (rows, cols), (name, arr.shape, (rows, cols))
        return buf.at[off:off + rows, :cols].set(arr.astype(jnp.float32))

    buf = put(buf, "emb_w",
              jnp.concatenate([params["pos_w"], params["embed_w"]], axis=0))
    buf = put(buf, "emb_b", params["pos_b"] + params["embed_b"])
    D = dmodel
    for l, lp in enumerate(params["layers"]):
        in_w, in_b = lp["in_proj_w"], lp["in_proj_b"]
        buf = put(buf, f"q_w{l}", in_w[:, 0:D] * scale)
        buf = put(buf, f"q_b{l}", in_b[:, 0:D] * scale)
        buf = put(buf, f"k_w{l}", in_w[:, D:2 * D])
        buf = put(buf, f"k_b{l}", in_b[:, D:2 * D])
        buf = put(buf, f"v_w{l}", in_w[:, 2 * D:3 * D])
        buf = put(buf, f"v_b{l}", in_b[:, 2 * D:3 * D])
        buf = put(buf, f"o_w{l}", lp["out_proj_w"])
        buf = put(buf, f"o_b{l}", lp["out_proj_b"])
        buf = put(buf, f"ff1_w{l}", lp["ff1_w"])
        buf = put(buf, f"ff1_b{l}", lp["ff1_b"])
        buf = put(buf, f"ff2_w{l}", lp["ff2_w"])
        buf = put(buf, f"ff2_b{l}", lp["ff2_b"])
        buf = put(buf, f"ln1_g{l}", lp["ln1_g"])
        buf = put(buf, f"ln1_b{l}", lp["ln1_b"])
        buf = put(buf, f"ln2_g{l}", lp["ln2_g"])
        buf = put(buf, f"ln2_b{l}", lp["ln2_b"])
    buf = put(buf, "cls_w", params["cls_w"])
    buf = put(buf, "cls_b", params["cls_b"])
    return buf


# ------------------------------ fused kernel ------------------------------

def _full_spec(shape):
    nd = len(shape)
    return pl.BlockSpec(shape, lambda i, _nd=nd: (0,) * _nd)


def _forward_kernel(x_ref, w_ref, out_ref, *, S, B, H, dh, nlayers, layout,
                    eps=1e-5):
    """Entire TransformerClassifier forward on VMEM-resident data.

    x_ref: (B*S, data_dim) activations, batch-major rows (row = b*S + s).
    w_ref: (R, 128) packed parameter buffer; static sublane-aligned sub-views
           are carved via `layout`.
    """
    BS = B * S
    D = H * dh

    def getw(name):
        off, rows, cols = layout[name]
        return w_ref[off:off + rows, 0:cols]

    def dot(x, y):
        # bf16 operands, f32 accumulation: MXU-native on v5e/v6e/v7x.
        return jnp.dot(x.astype(jnp.bfloat16), y.astype(jnp.bfloat16),
                       preferred_element_type=jnp.float32)

    def layernorm(y, g, b):
        mean = jnp.mean(y, axis=-1, keepdims=True)
        var = jnp.mean((y - mean) ** 2, axis=-1, keepdims=True)
        return (y - mean) * jax.lax.rsqrt(var + eps) * g + b

    # Block-diagonal (per-batch) attention mask, built once and reused by every
    # layer / head: 0 within a batch, -1e30 across batches.  Built with
    # comparisons only (no vector integer division).
    r = jax.lax.broadcasted_iota(jnp.int32, (BS, BS), 0)
    c = jax.lax.broadcasted_iota(jnp.int32, (BS, BS), 1)
    same = jnp.zeros((BS, BS), jnp.bool_)
    for b in range(B):
        in_r = (r >= b * S) & (r < (b + 1) * S)
        in_c = (c >= b * S) & (c < (b + 1) * S)
        same = same | (in_r & in_c)
    mask = jnp.where(same, 0.0, -1e30).astype(jnp.float32)

    # --- fused positional + data embedding (weights packed row-wise) ---
    h = dot(x_ref[...], getw("emb_w")) + getw("emb_b")          # (BS, D) f32

    for l in range(nlayers):                 # static unroll, nlayers is small
        # --- self attention: q/k/v weights pre-split, q pre-scaled ---
        q = dot(h, getw(f"q_w{l}")) + getw(f"q_b{l}")
        k = dot(h, getw(f"k_w{l}")) + getw(f"k_b{l}")
        v = dot(h, getw(f"v_w{l}")) + getw(f"v_b{l}")
        o_w = getw(f"o_w{l}")
        attn = jnp.zeros((BS, D), jnp.float32) + getw(f"o_b{l}")
        for hd in range(H):      # one masked (BS, BS) score matrix per head
            c0, c1 = hd * dh, (hd + 1) * dh
            # rhs-transposed contraction folds K^T into the matmul (f32 kept
            # here: tiny dot, robust lowering for the transposed operand).
            s = jax.lax.dot_general(q[:, c0:c1], k[:, c0:c1],
                                    (((1,), (1,)), ((), ())),
                                    preferred_element_type=jnp.float32) + mask
            p = jnp.exp(s - jnp.max(s, axis=-1, keepdims=True))
            p = p * pl.reciprocal(jnp.sum(p, axis=-1, keepdims=True),
                                  approx=True)
            # fold the output projection into the head loop: no concatenates.
            attn = attn + dot(dot(p, v[:, c0:c1]), o_w[c0:c1, :])
        h = layernorm(h + attn, getw(f"ln1_g{l}"), getw(f"ln1_b{l}"))

        # --- feed forward ---
        ff = jnp.maximum(dot(h, getw(f"ff1_w{l}")) + getw(f"ff1_b{l}"), 0.0)
        ff = dot(ff, getw(f"ff2_w{l}")) + getw(f"ff2_b{l}")
        h = layernorm(h + ff, getw(f"ln2_g{l}"), getw(f"ln2_b{l}"))

    # --- max over the B axis (torch.max(encoder_out, dim=1)) + classifier ---
    pooled = h[0:S, :]
    for b in range(1, B):
        pooled = jnp.maximum(pooled, h[b * S:(b + 1) * S, :])
    # TODO(synk): output is (S, nclasses=5) -> masked partial store; pad to a
    # lane-friendly width only if this kernel is ever run per-grid-step.
    out_ref[...] = (dot(pooled, getw("cls_w")) + getw("cls_b")).astype(out_ref.dtype)


def transformer_classifier_forward(src, packed_w, *, nhead, dmodel, dhid,
                                   nclasses, nlayers):
    # src: (S, B, data_dim)  ->  output (S, nclasses)
    S, B, data_dim = src.shape
    dh = dmodel // nhead

    # Single cheap relayout to batch-major rows (row = b*S + s); everything
    # else happens inside the one fused kernel with exactly two input DMAs.
    x2d = src.transpose(1, 0, 2).reshape(B * S, data_dim)

    layout, _ = _param_layout(data_dim, dmodel, dhid, nclasses, nlayers)
    kernel = functools.partial(_forward_kernel, S=S, B=B, H=nhead, dh=dh,
                               nlayers=nlayers, layout=layout)
    return pl.pallas_call(
        kernel,
        out_shape=jax.ShapeDtypeStruct((S, nclasses), src.dtype),
        grid=(1,),
        in_specs=[_full_spec(x2d.shape), _full_spec(packed_w.shape)],
        out_specs=_full_spec((S, nclasses)),
        compiler_params=pltpu.CompilerParams(
            dimension_semantics=("arbitrary",),
            # Residency budget: packed weights (~350 KB, double-buffered) +
            # activations (<10 KB) — far below VMEM on v5e/v6e (128 MiB) and
            # v7x (64 MiB).  Limit set explicitly to document headroom.
            vmem_limit_bytes=32 * 1024 * 1024),
    )(x2d, packed_w)


# ------------------------------ init / driver ------------------------------

def init_params(key, dmodel, nhead, dhid, nlayers, data_dim, nclasses):
    def dense(k, din, dout):
        kw, kb = jax.random.split(k)
        w = jax.random.normal(kw, (din, dout), jnp.float32) * 0.05
        b = jax.random.normal(kb, (1, dout), jnp.float32) * 0.02
        return w, b

    keys = jax.random.split(key, 3 + nlayers)
    pos_w, pos_b = dense(keys[0], 1, dmodel)
    embed_w, embed_b = dense(keys[1], data_dim - 1, dmodel)
    cls_w, cls_b = dense(keys[2], dmodel, nclasses)

    layers = []
    for i in range(nlayers):
        lk = jax.random.split(keys[3 + i], 6)
        in_w, in_b = dense(lk[0], dmodel, 3 * dmodel)
        out_w, out_b = dense(lk[1], dmodel, dmodel)
        ff1_w, ff1_b = dense(lk[2], dmodel, dhid)
        ff2_w, ff2_b = dense(lk[3], dhid, dmodel)
        ln1_g = 1.0 + 0.01 * jax.random.normal(lk[4], (1, dmodel), jnp.float32)
        ln2_g = 1.0 + 0.01 * jax.random.normal(lk[5], (1, dmodel), jnp.float32)
        layers.append(dict(
            in_proj_w=in_w, in_proj_b=in_b,
            out_proj_w=out_w, out_proj_b=out_b,
            ff1_w=ff1_w, ff1_b=ff1_b, ff2_w=ff2_w, ff2_b=ff2_b,
            ln1_g=ln1_g, ln1_b=jnp.zeros((1, dmodel), jnp.float32),
            ln2_g=ln2_g, ln2_b=jnp.zeros((1, dmodel), jnp.float32),
        ))

    return dict(pos_w=pos_w, pos_b=pos_b, embed_w=embed_w, embed_b=embed_b,
                cls_w=cls_w, cls_b=cls_b, layers=layers)


if __name__ == "__main__":
    # Module hyper-params (ntoken only affects the unused num_params attribute).
    ntoken, dmodel, nhead, dhid, nlayers = 16, 32, 4, 64, 2
    data_dim, nclasses = 9, 5
    S, B = 8, 2  # seq (attention axis), batch (max-pooled axis)

    key = jax.random.PRNGKey(0)
    kparams, kx = jax.random.split(key)
    params = init_params(kparams, dmodel, nhead, dhid, nlayers, data_dim, nclasses)
    src = jax.random.normal(kx, (S, B, data_dim), dtype=jnp.float32)

    # One-time repack of all weights into a single contiguous buffer (not on
    # the per-call hot path).
    packed_w = jax.device_put(pack_params(params, nhead))
    jax.block_until_ready(packed_w)

    fwd = jax.jit(functools.partial(
        transformer_classifier_forward, nhead=nhead, dmodel=dmodel, dhid=dhid,
        nclasses=nclasses, nlayers=nlayers))
    out = fwd(src, packed_w)
    jax.block_until_ready(out)

    assert out.shape == (S, nclasses), out.shape
    assert jnp.all(jnp.isfinite(out))
    print("KERNEL_OK")
</pallas_src>

<mosaic_0001>
module attributes {stable_mosaic.version = 11 : i64} {
  func.func @_forward_kernel(%arg0: i32, %arg1: memref<16x9xf32, #tpu.memory_space<vmem>>, %arg2: memref<672x128xf32, #tpu.memory_space<vmem>>, %arg3: memref<8x5xf32, #tpu.memory_space<vmem>>) attributes {dimension_semantics = [#tpu.dimension_semantics<arbitrary>], iteration_bounds = array<i64: 1>, scalar_prefetch = 0 : i64, scratch_operands = 0 : i64, tpu.core_type = #tpu.core_type<tc>, window_params = [{pipeline_mode = #tpu.pipeline_mode<synchronous>, transform_indices = @transform_0, window_bounds = array<i64: 16, 9>}, {pipeline_mode = #tpu.pipeline_mode<synchronous>, transform_indices = @transform_1, window_bounds = array<i64: 672, 128>}, {pipeline_mode = #tpu.pipeline_mode<synchronous>, transform_indices = @transform_2, window_bounds = array<i64: 8, 5>}]} {
    %0 = tpu.iota {dimensions = array<i32: 0>} : vector<16x16xi32>
    %1 = tpu.iota {dimensions = array<i32: 1>} : vector<16x16xi32>
    %false = arith.constant false
    %2 = vector.broadcast %false : i1 to vector<16x16xi1>
    %c0_i32 = arith.constant 0 : i32
    %3 = vector.broadcast %c0_i32 : i32 to vector<16x16xi32>
    %4 = arith.cmpi sge, %0, %3 : vector<16x16xi32>
    %c8_i32 = arith.constant 8 : i32
    %5 = vector.broadcast %c8_i32 : i32 to vector<16x16xi32>
    %6 = arith.cmpi slt, %0, %5 : vector<16x16xi32>
    %7 = arith.andi %4, %6 : vector<16x16xi1>
    %c0_i32_0 = arith.constant 0 : i32
    %8 = vector.broadcast %c0_i32_0 : i32 to vector<16x16xi32>
    %9 = arith.cmpi sge, %1, %8 : vector<16x16xi32>
    %c8_i32_1 = arith.constant 8 : i32
    %10 = vector.broadcast %c8_i32_1 : i32 to vector<16x16xi32>
    %11 = arith.cmpi slt, %1, %10 : vector<16x16xi32>
    %12 = arith.andi %9, %11 : vector<16x16xi1>
    %13 = arith.andi %7, %12 : vector<16x16xi1>
    %14 = arith.ori %2, %13 : vector<16x16xi1>
    %c8_i32_2 = arith.constant 8 : i32
    %15 = vector.broadcast %c8_i32_2 : i32 to vector<16x16xi32>
    %16 = arith.cmpi sge, %0, %15 : vector<16x16xi32>
    %c16_i32 = arith.constant 16 : i32
    %17 = vector.broadcast %c16_i32 : i32 to vector<16x16xi32>
    %18 = arith.cmpi slt, %0, %17 : vector<16x16xi32>
    %19 = arith.andi %16, %18 : vector<16x16xi1>
    %c8_i32_3 = arith.constant 8 : i32
    %20 = vector.broadcast %c8_i32_3 : i32 to vector<16x16xi32>
    %21 = arith.cmpi sge, %1, %20 : vector<16x16xi32>
    %c16_i32_4 = arith.constant 16 : i32
    %22 = vector.broadcast %c16_i32_4 : i32 to vector<16x16xi32>
    %23 = arith.cmpi slt, %1, %22 : vector<16x16xi32>
    %24 = arith.andi %21, %23 : vector<16x16xi1>
    %25 = arith.andi %19, %24 : vector<16x16xi1>
    %26 = arith.ori %14, %25 : vector<16x16xi1>
    %cst = arith.constant 0.000000e+00 : f32
    %cst_5 = arith.constant -1.000000e+30 : f32
    %27 = vector.broadcast %cst : f32 to vector<16x16xf32>
    %28 = vector.broadcast %cst_5 : f32 to vector<16x16xf32>
    %29 = arith.select %26, %27, %28 : vector<16x16xi1>, vector<16x16xf32>
    %c0 = arith.constant 0 : index
    %c0_6 = arith.constant 0 : index
    %30 = vector.load %arg1[%c0, %c0_6] : memref<16x9xf32, #tpu.memory_space<vmem>>, vector<16x9xf32>
    %c0_7 = arith.constant 0 : index
    %c0_8 = arith.constant 0 : index
    %31 = vector.load %arg2[%c0_7, %c0_8] : memref<672x128xf32, #tpu.memory_space<vmem>>, vector<9x32xf32>
    %32 = arith.truncf %30 : vector<16x9xf32> to vector<16x9xbf16>
    %33 = arith.truncf %31 : vector<9x32xf32> to vector<9x32xbf16>
    %cst_9 = arith.constant dense<0.000000e+00> : vector<16x32xf32>
    %34 = tpu.matmul %32, %33, %cst_9 {dimension_numbers = #tpu.dot_dimension_numbers<[1], [0], [0], [1], [0, 0, 1, 1], [], []>} : vector<16x9xbf16>, vector<9x32xbf16>, vector<16x32xf32> -> vector<16x32xf32>
    %c16 = arith.constant 16 : index
    %c0_10 = arith.constant 0 : index
    %35 = vector.load %arg2[%c16, %c0_10] : memref<672x128xf32, #tpu.memory_space<vmem>>, vector<1x32xf32>
    %36 = vector.broadcast %35 : vector<1x32xf32> to vector<16x32xf32>
    %37 = arith.addf %34, %36 : vector<16x32xf32>
    %c24 = arith.constant 24 : index
    %c0_11 = arith.constant 0 : index
    %38 = vector.load %arg2[%c24, %c0_11] : memref<672x128xf32, #tpu.memory_space<vmem>>, vector<32x32xf32>
    %39 = arith.truncf %37 : vector<16x32xf32> to vector<16x32xbf16>
    %40 = arith.truncf %38 : vector<32x32xf32> to vector<32x32xbf16>
    %cst_12 = arith.constant dense<0.000000e+00> : vector<16x32xf32>
    %41 = tpu.matmul %39, %40, %cst_12 {dimension_numbers = #tpu.dot_dimension_numbers<[1], [0], [0], [1], [0, 0, 1, 1], [], []>} : vector<16x32xbf16>, vector<32x32xbf16>, vector<16x32xf32> -> vector<16x32xf32>
    %c56 = arith.constant 56 : index
    %c0_13 = arith.constant 0 : index
    %42 = vector.load %arg2[%c56, %c0_13] : memref<672x128xf32, #tpu.memory_space<vmem>>, vector<1x32xf32>
    %43 = vector.broadcast %42 : vector<1x32xf32> to vector<16x32xf32>
    %44 = arith.addf %41, %43 : vector<16x32xf32>
    %c64 = arith.constant 64 : index
    %c0_14 = arith.constant 0 : index
    %45 = vector.load %arg2[%c64, %c0_14] : memref<672x128xf32, #tpu.memory_space<vmem>>, vector<32x32xf32>
    %46 = arith.truncf %37 : vector<16x32xf32> to vector<16x32xbf16>
    %47 = arith.truncf %45 : vector<32x32xf32> to vector<32x32xbf16>
    %cst_15 = arith.constant dense<0.000000e+00> : vector<16x32xf32>
    %48 = tpu.matmul %46, %47, %cst_15 {dimension_numbers = #tpu.dot_dimension_numbers<[1], [0], [0], [1], [0, 0, 1, 1], [], []>} : vector<16x32xbf16>, vector<32x32xbf16>, vector<16x32xf32> -> vector<16x32xf32>
    %c96 = arith.constant 96 : index
    %c0_16 = arith.constant 0 : index
    %49 = vector.load %arg2[%c96, %c0_16] : memref<672x128xf32, #tpu.memory_space<vmem>>, vector<1x32xf32>
    %50 = vector.broadcast %49 : vector<1x32xf32> to vector<16x32xf32>
    %51 = arith.addf %48, %50 : vector<16x32xf32>
    %c104 = arith.constant 104 : index
    %c0_17 = arith.constant 0 : index
    %52 = vector.load %arg2[%c104, %c0_17] : memref<672x128xf32, #tpu.memory_space<vmem>>, vector<32x32xf32>
    %53 = arith.truncf %37 : vector<16x32xf32> to vector<16x32xbf16>
    %54 = arith.truncf %52 : vector<32x32xf32> to vector<32x32xbf16>
    %cst_18 = arith.constant dense<0.000000e+00> : vector<16x32xf32>
    %55 = tpu.matmul %53, %54, %cst_18 {dimension_numbers = #tpu.dot_dimension_numbers<[1], [0], [0], [1], [0, 0, 1, 1], [], []>} : vector<16x32xbf16>, vector<32x32xbf16>, vector<16x32xf32> -> vector<16x32xf32>
    %c136 = arith.constant 136 : index
    %c0_19 = arith.constant 0 : index
    %56 = vector.load %arg2[%c136, %c0_19] : memref<672x128xf32, #tpu.memory_space<vmem>>, vector<1x32xf32>
    %57 = vector.broadcast %56 : vector<1x32xf32> to vector<16x32xf32>
    %58 = arith.addf %55, %57 : vector<16x32xf32>
    %c144 = arith.constant 144 : index
    %c0_20 = arith.constant 0 : index
    %59 = vector.load %arg2[%c144, %c0_20] : memref<672x128xf32, #tpu.memory_space<vmem>>, vector<32x32xf32>
    %cst_21 = arith.constant 0.000000e+00 : f32
    %60 = vector.broadcast %cst_21 : f32 to vector<16x32xf32>
    %c176 = arith.constant 176 : index
    %c0_22 = arith.constant 0 : index
    %61 = vector.load %arg2[%c176, %c0_22] : memref<672x128xf32, #tpu.memory_space<vmem>>, vector<1x32xf32>
    %62 = vector.broadcast %61 : vector<1x32xf32> to vector<16x32xf32>
    %63 = arith.addf %60, %62 : vector<16x32xf32>
    %64 = vector.extract_strided_slice %44 {offsets = [0, 0], sizes = [16, 8], strides = [1, 1]} : vector<16x32xf32> to vector<16x8xf32>
    %65 = vector.extract_strided_slice %51 {offsets = [0, 0], sizes = [16, 8], strides = [1, 1]} : vector<16x32xf32> to vector<16x8xf32>
    %cst_23 = arith.constant dense<0.000000e+00> : vector<16x16xf32>
    %66 = tpu.matmul %64, %65, %cst_23 {dimension_numbers = #tpu.dot_dimension_numbers<[1], [1], [0], [0], [0, 0, 1, 0], [], []>} : vector<16x8xf32>, vector<16x8xf32>, vector<16x16xf32> -> vector<16x16xf32>
    %67 = arith.addf %66, %29 : vector<16x16xf32>
    %cst_24 = arith.constant dense<0xFF800000> : vector<16xf32>
    %68 = vector.multi_reduction <maximumf>, %67, %cst_24 [1] : vector<16x16xf32> to vector<16xf32>
    %69 = vector.shape_cast %68 : vector<16xf32> to vector<16x1xf32>
    %70 = vector.broadcast %69 : vector<16x1xf32> to vector<16x16xf32>
    %71 = arith.subf %67, %70 : vector<16x16xf32>
    %72 = math.exp %71 : vector<16x16xf32>
    %cst_25 = arith.constant dense<0.000000e+00> : vector<16xf32>
    %73 = vector.multi_reduction <add>, %72, %cst_25 [1] : vector<16x16xf32> to vector<16xf32>
    %74 = vector.shape_cast %73 : vector<16xf32> to vector<16x1xf32>
    %75 = tpu.reciprocal %74 {approx = true} : vector<16x1xf32> -> vector<16x1xf32>
    %76 = vector.broadcast %75 : vector<16x1xf32> to vector<16x16xf32>
    %77 = arith.mulf %72, %76 : vector<16x16xf32>
    %78 = vector.extract_strided_slice %58 {offsets = [0, 0], sizes = [16, 8], strides = [1, 1]} : vector<16x32xf32> to vector<16x8xf32>
    %79 = arith.truncf %77 : vector<16x16xf32> to vector<16x16xbf16>
    %80 = arith.truncf %78 : vector<16x8xf32> to vector<16x8xbf16>
    %cst_26 = arith.constant dense<0.000000e+00> : vector<16x8xf32>
    %81 = tpu.matmul %79, %80, %cst_26 {dimension_numbers = #tpu.dot_dimension_numbers<[1], [0], [0], [1], [0, 0, 1, 1], [], []>} : vector<16x16xbf16>, vector<16x8xbf16>, vector<16x8xf32> -> vector<16x8xf32>
    %82 = vector.extract_strided_slice %59 {offsets = [0, 0], sizes = [8, 32], strides = [1, 1]} : vector<32x32xf32> to vector<8x32xf32>
    %83 = arith.truncf %81 : vector<16x8xf32> to vector<16x8xbf16>
    %84 = arith.truncf %82 : vector<8x32xf32> to vector<8x32xbf16>
    %cst_27 = arith.constant dense<0.000000e+00> : vector<16x32xf32>
    %85 = tpu.matmul %83, %84, %cst_27 {dimension_numbers = #tpu.dot_dimension_numbers<[1], [0], [0], [1], [0, 0, 1, 1], [], []>} : vector<16x8xbf16>, vector<8x32xbf16>, vector<16x32xf32> -> vector<16x32xf32>
    %86 = arith.addf %63, %85 : vector<16x32xf32>
    %87 = vector.extract_strided_slice %44 {offsets = [0, 8], sizes = [16, 8], strides = [1, 1]} : vector<16x32xf32> to vector<16x8xf32>
    %88 = vector.extract_strided_slice %51 {offsets = [0, 8], sizes = [16, 8], strides = [1, 1]} : vector<16x32xf32> to vector<16x8xf32>
    %cst_28 = arith.constant dense<0.000000e+00> : vector<16x16xf32>
    %89 = tpu.matmul %87, %88, %cst_28 {dimension_numbers = #tpu.dot_dimension_numbers<[1], [1], [0], [0], [0, 0, 1, 0], [], []>} : vector<16x8xf32>, vector<16x8xf32>, vector<16x16xf32> -> vector<16x16xf32>
    %90 = arith.addf %89, %29 : vector<16x16xf32>
    %cst_29 = arith.constant dense<0xFF800000> : vector<16xf32>
    %91 = vector.multi_reduction <maximumf>, %90, %cst_29 [1] : vector<16x16xf32> to vector<16xf32>
    %92 = vector.shape_cast %91 : vector<16xf32> to vector<16x1xf32>
    %93 = vector.broadcast %92 : vector<16x1xf32> to vector<16x16xf32>
    %94 = arith.subf %90, %93 : vector<16x16xf32>
    %95 = math.exp %94 : vector<16x16xf32>
    %cst_30 = arith.constant dense<0.000000e+00> : vector<16xf32>
    %96 = vector.multi_reduction <add>, %95, %cst_30 [1] : vector<16x16xf32> to vector<16xf32>
    %97 = vector.shape_cast %96 : vector<16xf32> to vector<16x1xf32>
    %98 = tpu.reciprocal %97 {approx = true} : vector<16x1xf32> -> vector<16x1xf32>
    %99 = vector.broadcast %98 : vector<16x1xf32> to vector<16x16xf32>
    %100 = arith.mulf %95, %99 : vector<16x16xf32>
    %101 = vector.extract_strided_slice %58 {offsets = [0, 8], sizes = [16, 8], strides = [1, 1]} : vector<16x32xf32> to vector<16x8xf32>
    %102 = arith.truncf %100 : vector<16x16xf32> to vector<16x16xbf16>
    %103 = arith.truncf %101 : vector<16x8xf32> to vector<16x8xbf16>
    %cst_31 = arith.constant dense<0.000000e+00> : vector<16x8xf32>
    %104 = tpu.matmul %102, %103, %cst_31 {dimension_numbers = #tpu.dot_dimension_numbers<[1], [0], [0], [1], [0, 0, 1, 1], [], []>} : vector<16x16xbf16>, vector<16x8xbf16>, vector<16x8xf32> -> vector<16x8xf32>
    %105 = vector.extract_strided_slice %59 {offsets = [8, 0], sizes = [8, 32], strides = [1, 1]} : vector<32x32xf32> to vector<8x32xf32>
    %106 = arith.truncf %104 : vector<16x8xf32> to vector<16x8xbf16>
    %107 = arith.truncf %105 : vector<8x32xf32> to vector<8x32xbf16>
    %cst_32 = arith.constant dense<0.000000e+00> : vector<16x32xf32>
    %108 = tpu.matmul %106, %107, %cst_32 {dimension_numbers = #tpu.dot_dimension_numbers<[1], [0], [0], [1], [0, 0, 1, 1], [], []>} : vector<16x8xbf16>, vector<8x32xbf16>, vector<16x32xf32> -> vector<16x32xf32>
    %109 = arith.addf %86, %108 : vector<16x32xf32>
    %110 = vector.extract_strided_slice %44 {offsets = [0, 16], sizes = [16, 8], strides = [1, 1]} : vector<16x32xf32> to vector<16x8xf32>
    %111 = vector.extract_strided_slice %51 {offsets = [0, 16], sizes = [16, 8], strides = [1, 1]} : vector<16x32xf32> to vector<16x8xf32>
    %cst_33 = arith.constant dense<0.000000e+00> : vector<16x16xf32>
    %112 = tpu.matmul %110, %111, %cst_33 {dimension_numbers = #tpu.dot_dimension_numbers<[1], [1], [0], [0], [0, 0, 1, 0], [], []>} : vector<16x8xf32>, vector<16x8xf32>, vector<16x16xf32> -> vector<16x16xf32>
    %113 = arith.addf %112, %29 : vector<16x16xf32>
    %cst_34 = arith.constant dense<0xFF800000> : vector<16xf32>
    %114 = vector.multi_reduction <maximumf>, %113, %cst_34 [1] : vector<16x16xf32> to vector<16xf32>
    %115 = vector.shape_cast %114 : vector<16xf32> to vector<16x1xf32>
    %116 = vector.broadcast %115 : vector<16x1xf32> to vector<16x16xf32>
    %117 = arith.subf %113, %116 : vector<16x16xf32>
    %118 = math.exp %117 : vector<16x16xf32>
    %cst_35 = arith.constant dense<0.000000e+00> : vector<16xf32>
    %119 = vector.multi_reduction <add>, %118, %cst_35 [1] : vector<16x16xf32> to vector<16xf32>
    %120 = vector.shape_cast %119 : vector<16xf32> to vector<16x1xf32>
    %121 = tpu.reciprocal %120 {approx = true} : vector<16x1xf32> -> vector<16x1xf32>
    %122 = vector.broadcast %121 : vector<16x1xf32> to vector<16x16xf32>
    %123 = arith.mulf %118, %122 : vector<16x16xf32>
    %124 = vector.extract_strided_slice %58 {offsets = [0, 16], sizes = [16, 8], strides = [1, 1]} : vector<16x32xf32> to vector<16x8xf32>
    %125 = arith.truncf %123 : vector<16x16xf32> to vector<16x16xbf16>
    %126 = arith.truncf %124 : vector<16x8xf32> to vector<16x8xbf16>
    %cst_36 = arith.constant dense<0.000000e+00> : vector<16x8xf32>
    %127 = tpu.matmul %125, %126, %cst_36 {dimension_numbers = #tpu.dot_dimension_numbers<[1], [0], [0], [1], [0, 0, 1, 1], [], []>} : vector<16x16xbf16>, vector<16x8xbf16>, vector<16x8xf32> -> vector<16x8xf32>
    %128 = vector.extract_strided_slice %59 {offsets = [16, 0], sizes = [8, 32], strides = [1, 1]} : vector<32x32xf32> to vector<8x32xf32>
    %129 = arith.truncf %127 : vector<16x8xf32> to vector<16x8xbf16>
    %130 = arith.truncf %128 : vector<8x32xf32> to vector<8x32xbf16>
    %cst_37 = arith.constant dense<0.000000e+00> : vector<16x32xf32>
    %131 = tpu.matmul %129, %130, %cst_37 {dimension_numbers = #tpu.dot_dimension_numbers<[1], [0], [0], [1], [0, 0, 1, 1], [], []>} : vector<16x8xbf16>, vector<8x32xbf16>, vector<16x32xf32> -> vector<16x32xf32>
    %132 = arith.addf %109, %131 : vector<16x32xf32>
    %133 = vector.extract_strided_slice %44 {offsets = [0, 24], sizes = [16, 8], strides = [1, 1]} : vector<16x32xf32> to vector<16x8xf32>
    %134 = vector.extract_strided_slice %51 {offsets = [0, 24], sizes = [16, 8], strides = [1, 1]} : vector<16x32xf32> to vector<16x8xf32>
    %cst_38 = arith.constant dense<0.000000e+00> : vector<16x16xf32>
    %135 = tpu.matmul %133, %134, %cst_38 {dimension_numbers = #tpu.dot_dimension_numbers<[1], [1], [0], [0], [0, 0, 1, 0], [], []>} : vector<16x8xf32>, vector<16x8xf32>, vector<16x16xf32> -> vector<16x16xf32>
    %136 = arith.addf %135, %29 : vector<16x16xf32>
    %cst_39 = arith.constant dense<0xFF800000> : vector<16xf32>
    %137 = vector.multi_reduction <maximumf>, %136, %cst_39 [1] : vector<16x16xf32> to vector<16xf32>
    %138 = vector.shape_cast %137 : vector<16xf32> to vector<16x1xf32>
    %139 = vector.broadcast %138 : vector<16x1xf32> to vector<16x16xf32>
    %140 = arith.subf %136, %139 : vector<16x16xf32>
    %141 = math.exp %140 : vector<16x16xf32>
    %cst_40 = arith.constant dense<0.000000e+00> : vector<16xf32>
    %142 = vector.multi_reduction <add>, %141, %cst_40 [1] : vector<16x16xf32> to vector<16xf32>
    %143 = vector.shape_cast %142 : vector<16xf32> to vector<16x1xf32>
    %144 = tpu.reciprocal %143 {approx = true} : vector<16x1xf32> -> vector<16x1xf32>
    %145 = vector.broadcast %144 : vector<16x1xf32> to vector<16x16xf32>
    %146 = arith.mulf %141, %145 : vector<16x16xf32>
    %147 = vector.extract_strided_slice %58 {offsets = [0, 24], sizes = [16, 8], strides = [1, 1]} : vector<16x32xf32> to vector<16x8xf32>
    %148 = arith.truncf %146 : vector<16x16xf32> to vector<16x16xbf16>
    %149 = arith.truncf %147 : vector<16x8xf32> to vector<16x8xbf16>
    %cst_41 = arith.constant dense<0.000000e+00> : vector<16x8xf32>
    %150 = tpu.matmul %148, %149, %cst_41 {dimension_numbers = #tpu.dot_dimension_numbers<[1], [0], [0], [1], [0, 0, 1, 1], [], []>} : vector<16x16xbf16>, vector<16x8xbf16>, vector<16x8xf32> -> vector<16x8xf32>
    %151 = vector.extract_strided_slice %59 {offsets = [24, 0], sizes = [8, 32], strides = [1, 1]} : vector<32x32xf32> to vector<8x32xf32>
    %152 = arith.truncf %150 : vector<16x8xf32> to vector<16x8xbf16>
    %153 = arith.truncf %151 : vector<8x32xf32> to vector<8x32xbf16>
    %cst_42 = arith.constant dense<0.000000e+00> : vector<16x32xf32>
    %154 = tpu.matmul %152, %153, %cst_42 {dimension_numbers = #tpu.dot_dimension_numbers<[1], [0], [0], [1], [0, 0, 1, 1], [], []>} : vector<16x8xbf16>, vector<8x32xbf16>, vector<16x32xf32> -> vector<16x32xf32>
    %155 = arith.addf %132, %154 : vector<16x32xf32>
    %156 = arith.addf %37, %155 : vector<16x32xf32>
    %c296 = arith.constant 296 : index
    %c0_43 = arith.constant 0 : index
    %157 = vector.load %arg2[%c296, %c0_43] : memref<672x128xf32, #tpu.memory_space<vmem>>, vector<1x32xf32>
    %c304 = arith.constant 304 : index
    %c0_44 = arith.constant 0 : index
    %158 = vector.load %arg2[%c304, %c0_44] : memref<672x128xf32, #tpu.memory_space<vmem>>, vector<1x32xf32>
    %cst_45 = arith.constant dense<0.000000e+00> : vector<16xf32>
    %159 = vector.multi_reduction <add>, %156, %cst_45 [1] : vector<16x32xf32> to vector<16xf32>
    %160 = vector.shape_cast %159 : vector<16xf32> to vector<16x1xf32>
    %cst_46 = arith.constant 3.200000e+01 : f32
    %161 = vector.broadcast %cst_46 : f32 to vector<16x1xf32>
    %162 = arith.divf %160, %161 : vector<16x1xf32>
    %163 = vector.broadcast %162 : vector<16x1xf32> to vector<16x32xf32>
    %164 = arith.subf %156, %163 : vector<16x32xf32>
    %165 = arith.mulf %164, %164 : vector<16x32xf32>
    %cst_47 = arith.constant dense<0.000000e+00> : vector<16xf32>
    %166 = vector.multi_reduction <add>, %165, %cst_47 [1] : vector<16x32xf32> to vector<16xf32>
    %167 = vector.shape_cast %166 : vector<16xf32> to vector<16x1xf32>
    %cst_48 = arith.constant 3.200000e+01 : f32
    %168 = vector.broadcast %cst_48 : f32 to vector<16x1xf32>
    %169 = arith.divf %167, %168 : vector<16x1xf32>
    %170 = vector.broadcast %162 : vector<16x1xf32> to vector<16x32xf32>
    %171 = arith.subf %156, %170 : vector<16x32xf32>
    %cst_49 = arith.constant 9.99999974E-6 : f32
    %172 = vector.broadcast %cst_49 : f32 to vector<16x1xf32>
    %173 = arith.addf %169, %172 : vector<16x1xf32>
    %174 = math.rsqrt %173 : vector<16x1xf32>
    %175 = vector.broadcast %174 : vector<16x1xf32> to vector<16x32xf32>
    %176 = arith.mulf %171, %175 : vector<16x32xf32>
    %177 = vector.broadcast %157 : vector<1x32xf32> to vector<16x32xf32>
    %178 = arith.mulf %176, %177 : vector<16x32xf32>
    %179 = vector.broadcast %158 : vector<1x32xf32> to vector<16x32xf32>
    %180 = arith.addf %178, %179 : vector<16x32xf32>
    %c184 = arith.constant 184 : index
    %c0_50 = arith.constant 0 : index
    %181 = vector.load %arg2[%c184, %c0_50] : memref<672x128xf32, #tpu.memory_space<vmem>>, vector<32x64xf32>
    %182 = arith.truncf %180 : vector<16x32xf32> to vector<16x32xbf16>
    %183 = arith.truncf %181 : vector<32x64xf32> to vector<32x64xbf16>
    %cst_51 = arith.constant dense<0.000000e+00> : vector<16x64xf32>
    %184 = tpu.matmul %182, %183, %cst_51 {dimension_numbers = #tpu.dot_dimension_numbers<[1], [0], [0], [1], [0, 0, 1, 1], [], []>} : vector<16x32xbf16>, vector<32x64xbf16>, vector<16x64xf32> -> vector<16x64xf32>
    %c216 = arith.constant 216 : index
    %c0_52 = arith.constant 0 : index
    %185 = vector.load %arg2[%c216, %c0_52] : memref<672x128xf32, #tpu.memory_space<vmem>>, vector<1x64xf32>
    %186 = vector.broadcast %185 : vector<1x64xf32> to vector<16x64xf32>
    %187 = arith.addf %184, %186 : vector<16x64xf32>
    %cst_53 = arith.constant 0.000000e+00 : f32
    %188 = vector.broadcast %cst_53 : f32 to vector<16x64xf32>
    %189 = arith.maximumf %187, %188 : vector<16x64xf32>
    %c224 = arith.constant 224 : index
    %c0_54 = arith.constant 0 : index
    %190 = vector.load %arg2[%c224, %c0_54] : memref<672x128xf32, #tpu.memory_space<vmem>>, vector<64x32xf32>
    %191 = arith.truncf %189 : vector<16x64xf32> to vector<16x64xbf16>
    %192 = arith.truncf %190 : vector<64x32xf32> to vector<64x32xbf16>
    %cst_55 = arith.constant dense<0.000000e+00> : vector<16x32xf32>
    %193 = tpu.matmul %191, %192, %cst_55 {dimension_numbers = #tpu.dot_dimension_numbers<[1], [0], [0], [1], [0, 0, 1, 1], [], []>} : vector<16x64xbf16>, vector<64x32xbf16>, vector<16x32xf32> -> vector<16x32xf32>
    %c288 = arith.constant 288 : index
    %c0_56 = arith.constant 0 : index
    %194 = vector.load %arg2[%c288, %c0_56] : memref<672x128xf32, #tpu.memory_space<vmem>>, vector<1x32xf32>
    %195 = vector.broadcast %194 : vector<1x32xf32> to vector<16x32xf32>
    %196 = arith.addf %193, %195 : vector<16x32xf32>
    %197 = arith.addf %180, %196 : vector<16x32xf32>
    %c312 = arith.constant 312 : index
    %c0_57 = arith.constant 0 : index
    %198 = vector.load %arg2[%c312, %c0_57] : memref<672x128xf32, #tpu.memory_space<vmem>>, vector<1x32xf32>
    %c320 = arith.constant 320 : index
    %c0_58 = arith.constant 0 : index
    %199 = vector.load %arg2[%c320, %c0_58] : memref<672x128xf32, #tpu.memory_space<vmem>>, vector<1x32xf32>
    %cst_59 = arith.constant dense<0.000000e+00> : vector<16xf32>
    %200 = vector.multi_reduction <add>, %197, %cst_59 [1] : vector<16x32xf32> to vector<16xf32>
    %201 = vector.shape_cast %200 : vector<16xf32> to vector<16x1xf32>
    %cst_60 = arith.constant 3.200000e+01 : f32
    %202 = vector.broadcast %cst_60 : f32 to vector<16x1xf32>
    %203 = arith.divf %201, %202 : vector<16x1xf32>
    %204 = vector.broadcast %203 : vector<16x1xf32> to vector<16x32xf32>
    %205 = arith.subf %197, %204 : vector<16x32xf32>
    %206 = arith.mulf %205, %205 : vector<16x32xf32>
    %cst_61 = arith.constant dense<0.000000e+00> : vector<16xf32>
    %207 = vector.multi_reduction <add>, %206, %cst_61 [1] : vector<16x32xf32> to vector<16xf32>
    %208 = vector.shape_cast %207 : vector<16xf32> to vector<16x1xf32>
    %cst_62 = arith.constant 3.200000e+01 : f32
    %209 = vector.broadcast %cst_62 : f32 to vector<16x1xf32>
    %210 = arith.divf %208, %209 : vector<16x1xf32>
    %211 = vector.broadcast %203 : vector<16x1xf32> to vector<16x32xf32>
    %212 = arith.subf %197, %211 : vector<16x32xf32>
    %cst_63 = arith.constant 9.99999974E-6 : f32
    %213 = vector.broadcast %cst_63 : f32 to vector<16x1xf32>
    %214 = arith.addf %210, %213 : vector<16x1xf32>
    %215 = math.rsqrt %214 : vector<16x1xf32>
    %216 = vector.broadcast %215 : vector<16x1xf32> to vector<16x32xf32>
    %217 = arith.mulf %212, %216 : vector<16x32xf32>
    %218 = vector.broadcast %198 : vector<1x32xf32> to vector<16x32xf32>
    %219 = arith.mulf %217, %218 : vector<16x32xf32>
    %220 = vector.broadcast %199 : vector<1x32xf32> to vector<16x32xf32>
    %221 = arith.addf %219, %220 : vector<16x32xf32>
    %c328 = arith.constant 328 : index
    %c0_64 = arith.constant 0 : index
    %222 = vector.load %arg2[%c328, %c0_64] : memref<672x128xf32, #tpu.memory_space<vmem>>, vector<32x32xf32>
    %223 = arith.truncf %221 : vector<16x32xf32> to vector<16x32xbf16>
    %224 = arith.truncf %222 : vector<32x32xf32> to vector<32x32xbf16>
    %cst_65 = arith.constant dense<0.000000e+00> : vector<16x32xf32>
    %225 = tpu.matmul %223, %224, %cst_65 {dimension_numbers = #tpu.dot_dimension_numbers<[1], [0], [0], [1], [0, 0, 1, 1], [], []>} : vector<16x32xbf16>, vector<32x32xbf16>, vector<16x32xf32> -> vector<16x32xf32>
    %c360 = arith.constant 360 : index
    %c0_66 = arith.constant 0 : index
    %226 = vector.load %arg2[%c360, %c0_66] : memref<672x128xf32, #tpu.memory_space<vmem>>, vector<1x32xf32>
    %227 = vector.broadcast %226 : vector<1x32xf32> to vector<16x32xf32>
    %228 = arith.addf %225, %227 : vector<16x32xf32>
    %c368 = arith.constant 368 : index
    %c0_67 = arith.constant 0 : index
    %229 = vector.load %arg2[%c368, %c0_67] : memref<672x128xf32, #tpu.memory_space<vmem>>, vector<32x32xf32>
    %230 = arith.truncf %221 : vector<16x32xf32> to vector<16x32xbf16>
    %231 = arith.truncf %229 : vector<32x32xf32> to vector<32x32xbf16>
    %cst_68 = arith.constant dense<0.000000e+00> : vector<16x32xf32>
    %232 = tpu.matmul %230, %231, %cst_68 {dimension_numbers = #tpu.dot_dimension_numbers<[1], [0], [0], [1], [0, 0, 1, 1], [], []>} : vector<16x32xbf16>, vector<32x32xbf16>, vector<16x32xf32> -> vector<16x32xf32>
    %c400 = arith.constant 400 : index
    %c0_69 = arith.constant 0 : index
    %233 = vector.load %arg2[%c400, %c0_69] : memref<672x128xf32, #tpu.memory_space<vmem>>, vector<1x32xf32>
    %234 = vector.broadcast %233 : vector<1x32xf32> to vector<16x32xf32>
    %235 = arith.addf %232, %234 : vector<16x32xf32>
    %c408 = arith.constant 408 : index
    %c0_70 = arith.constant 0 : index
    %236 = vector.load %arg2[%c408, %c0_70] : memref<672x128xf32, #tpu.memory_space<vmem>>, vector<32x32xf32>
    %237 = arith.truncf %221 : vector<16x32xf32> to vector<16x32xbf16>
    %238 = arith.truncf %236 : vector<32x32xf32> to vector<32x32xbf16>
    %cst_71 = arith.constant dense<0.000000e+00> : vector<16x32xf32>
    %239 = tpu.matmul %237, %238, %cst_71 {dimension_numbers = #tpu.dot_dimension_numbers<[1], [0], [0], [1], [0, 0, 1, 1], [], []>} : vector<16x32xbf16>, vector<32x32xbf16>, vector<16x32xf32> -> vector<16x32xf32>
    %c440 = arith.constant 440 : index
    %c0_72 = arith.constant 0 : index
    %240 = vector.load %arg2[%c440, %c0_72] : memref<672x128xf32, #tpu.memory_space<vmem>>, vector<1x32xf32>
    %241 = vector.broadcast %240 : vector<1x32xf32> to vector<16x32xf32>
    %242 = arith.addf %239, %241 : vector<16x32xf32>
    %c448 = arith.constant 448 : index
    %c0_73 = arith.constant 0 : index
    %243 = vector.load %arg2[%c448, %c0_73] : memref<672x128xf32, #tpu.memory_space<vmem>>, vector<32x32xf32>
    %cst_74 = arith.constant 0.000000e+00 : f32
    %244 = vector.broadcast %cst_74 : f32 to vector<16x32xf32>
    %c480 = arith.constant 480 : index
    %c0_75 = arith.constant 0 : index
    %245 = vector.load %arg2[%c480, %c0_75] : memref<672x128xf32, #tpu.memory_space<vmem>>, vector<1x32xf32>
    %246 = vector.broadcast %245 : vector<1x32xf32> to vector<16x32xf32>
    %247 = arith.addf %244, %246 : vector<16x32xf32>
    %248 = vector.extract_strided_slice %228 {offsets = [0, 0], sizes = [16, 8], strides = [1, 1]} : vector<16x32xf32> to vector<16x8xf32>
    %249 = vector.extract_strided_slice %235 {offsets = [0, 0], sizes = [16, 8], strides = [1, 1]} : vector<16x32xf32> to vector<16x8xf32>
    %cst_76 = arith.constant dense<0.000000e+00> : vector<16x16xf32>
    %250 = tpu.matmul %248, %249, %cst_76 {dimension_numbers = #tpu.dot_dimension_numbers<[1], [1], [0], [0], [0, 0, 1, 0], [], []>} : vector<16x8xf32>, vector<16x8xf32>, vector<16x16xf32> -> vector<16x16xf32>
    %251 = arith.addf %250, %29 : vector<16x16xf32>
    %cst_77 = arith.constant dense<0xFF800000> : vector<16xf32>
    %252 = vector.multi_reduction <maximumf>, %251, %cst_77 [1] : vector<16x16xf32> to vector<16xf32>
    %253 = vector.shape_cast %252 : vector<16xf32> to vector<16x1xf32>
    %254 = vector.broadcast %253 : vector<16x1xf32> to vector<16x16xf32>
    %255 = arith.subf %251, %254 : vector<16x16xf32>
    %256 = math.exp %255 : vector<16x16xf32>
    %cst_78 = arith.constant dense<0.000000e+00> : vector<16xf32>
    %257 = vector.multi_reduction <add>, %256, %cst_78 [1] : vector<16x16xf32> to vector<16xf32>
    %258 = vector.shape_cast %257 : vector<16xf32> to vector<16x1xf32>
    %259 = tpu.reciprocal %258 {approx = true} : vector<16x1xf32> -> vector<16x1xf32>
    %260 = vector.broadcast %259 : vector<16x1xf32> to vector<16x16xf32>
    %261 = arith.mulf %256, %260 : vector<16x16xf32>
    %262 = vector.extract_strided_slice %242 {offsets = [0, 0], sizes = [16, 8], strides = [1, 1]} : vector<16x32xf32> to vector<16x8xf32>
    %263 = arith.truncf %261 : vector<16x16xf32> to vector<16x16xbf16>
    %264 = arith.truncf %262 : vector<16x8xf32> to vector<16x8xbf16>
    %cst_79 = arith.constant dense<0.000000e+00> : vector<16x8xf32>
    %265 = tpu.matmul %263, %264, %cst_79 {dimension_numbers = #tpu.dot_dimension_numbers<[1], [0], [0], [1], [0, 0, 1, 1], [], []>} : vector<16x16xbf16>, vector<16x8xbf16>, vector<16x8xf32> -> vector<16x8xf32>
    %266 = vector.extract_strided_slice %243 {offsets = [0, 0], sizes = [8, 32], strides = [1, 1]} : vector<32x32xf32> to vector<8x32xf32>
    %267 = arith.truncf %265 : vector<16x8xf32> to vector<16x8xbf16>
    %268 = arith.truncf %266 : vector<8x32xf32> to vector<8x32xbf16>
    %cst_80 = arith.constant dense<0.000000e+00> : vector<16x32xf32>
    %269 = tpu.matmul %267, %268, %cst_80 {dimension_numbers = #tpu.dot_dimension_numbers<[1], [0], [0], [1], [0, 0, 1, 1], [], []>} : vector<16x8xbf16>, vector<8x32xbf16>, vector<16x32xf32> -> vector<16x32xf32>
    %270 = arith.addf %247, %269 : vector<16x32xf32>
    %271 = vector.extract_strided_slice %228 {offsets = [0, 8], sizes = [16, 8], strides = [1, 1]} : vector<16x32xf32> to vector<16x8xf32>
    %272 = vector.extract_strided_slice %235 {offsets = [0, 8], sizes = [16, 8], strides = [1, 1]} : vector<16x32xf32> to vector<16x8xf32>
    %cst_81 = arith.constant dense<0.000000e+00> : vector<16x16xf32>
    %273 = tpu.matmul %271, %272, %cst_81 {dimension_numbers = #tpu.dot_dimension_numbers<[1], [1], [0], [0], [0, 0, 1, 0], [], []>} : vector<16x8xf32>, vector<16x8xf32>, vector<16x16xf32> -> vector<16x16xf32>
    %274 = arith.addf %273, %29 : vector<16x16xf32>
    %cst_82 = arith.constant dense<0xFF800000> : vector<16xf32>
    %275 = vector.multi_reduction <maximumf>, %274, %cst_82 [1] : vector<16x16xf32> to vector<16xf32>
    %276 = vector.shape_cast %275 : vector<16xf32> to vector<16x1xf32>
    %277 = vector.broadcast %276 : vector<16x1xf32> to vector<16x16xf32>
    %278 = arith.subf %274, %277 : vector<16x16xf32>
    %279 = math.exp %278 : vector<16x16xf32>
    %cst_83 = arith.constant dense<0.000000e+00> : vector<16xf32>
    %280 = vector.multi_reduction <add>, %279, %cst_83 [1] : vector<16x16xf32> to vector<16xf32>
    %281 = vector.shape_cast %280 : vector<16xf32> to vector<16x1xf32>
    %282 = tpu.reciprocal %281 {approx = true} : vector<16x1xf32> -> vector<16x1xf32>
    %283 = vector.broadcast %282 : vector<16x1xf32> to vector<16x16xf32>
    %284 = arith.mulf %279, %283 : vector<16x16xf32>
    %285 = vector.extract_strided_slice %242 {offsets = [0, 8], sizes = [16, 8], strides = [1, 1]} : vector<16x32xf32> to vector<16x8xf32>
    %286 = arith.truncf %284 : vector<16x16xf32> to vector<16x16xbf16>
    %287 = arith.truncf %285 : vector<16x8xf32> to vector<16x8xbf16>
    %cst_84 = arith.constant dense<0.000000e+00> : vector<16x8xf32>
    %288 = tpu.matmul %286, %287, %cst_84 {dimension_numbers = #tpu.dot_dimension_numbers<[1], [0], [0], [1], [0, 0, 1, 1], [], []>} : vector<16x16xbf16>, vector<16x8xbf16>, vector<16x8xf32> -> vector<16x8xf32>
    %289 = vector.extract_strided_slice %243 {offsets = [8, 0], sizes = [8, 32], strides = [1, 1]} : vector<32x32xf32> to vector<8x32xf32>
    %290 = arith.truncf %288 : vector<16x8xf32> to vector<16x8xbf16>
    %291 = arith.truncf %289 : vector<8x32xf32> to vector<8x32xbf16>
    %cst_85 = arith.constant dense<0.000000e+00> : vector<16x32xf32>
    %292 = tpu.matmul %290, %291, %cst_85 {dimension_numbers = #tpu.dot_dimension_numbers<[1], [0], [0], [1], [0, 0, 1, 1], [], []>} : vector<16x8xbf16>, vector<8x32xbf16>, vector<16x32xf32> -> vector<16x32xf32>
    %293 = arith.addf %270, %292 : vector<16x32xf32>
    %294 = vector.extract_strided_slice %228 {offsets = [0, 16], sizes = [16, 8], strides = [1, 1]} : vector<16x32xf32> to vector<16x8xf32>
    %295 = vector.extract_strided_slice %235 {offsets = [0, 16], sizes = [16, 8], strides = [1, 1]} : vector<16x32xf32> to vector<16x8xf32>
    %cst_86 = arith.constant dense<0.000000e+00> : vector<16x16xf32>
    %296 = tpu.matmul %294, %295, %cst_86 {dimension_numbers = #tpu.dot_dimension_numbers<[1], [1], [0], [0], [0, 0, 1, 0], [], []>} : vector<16x8xf32>, vector<16x8xf32>, vector<16x16xf32> -> vector<16x16xf32>
    %297 = arith.addf %296, %29 : vector<16x16xf32>
    %cst_87 = arith.constant dense<0xFF800000> : vector<16xf32>
    %298 = vector.multi_reduction <maximumf>, %297, %cst_87 [1] : vector<16x16xf32> to vector<16xf32>
    %299 = vector.shape_cast %298 : vector<16xf32> to vector<16x1xf32>
    %300 = vector.broadcast %299 : vector<16x1xf32> to vector<16x16xf32>
    %301 = arith.subf %297, %300 : vector<16x16xf32>
    %302 = math.exp %301 : vector<16x16xf32>
    %cst_88 = arith.constant dense<0.000000e+00> : vector<16xf32>
    %303 = vector.multi_reduction <add>, %302, %cst_88 [1] : vector<16x16xf32> to vector<16xf32>
    %304 = vector.shape_cast %303 : vector<16xf32> to vector<16x1xf32>
    %305 = tpu.reciprocal %304 {approx = true} : vector<16x1xf32> -> vector<16x1xf32>
    %306 = vector.broadcast %305 : vector<16x1xf32> to vector<16x16xf32>
    %307 = arith.mulf %302, %306 : vector<16x16xf32>
    %308 = vector.extract_strided_slice %242 {offsets = [0, 16], sizes = [16, 8], strides = [1, 1]} : vector<16x32xf32> to vector<16x8xf32>
    %309 = arith.truncf %307 : vector<16x16xf32> to vector<16x16xbf16>
    %310 = arith.truncf %308 : vector<16x8xf32> to vector<16x8xbf16>
    %cst_89 = arith.constant dense<0.000000e+00> : vector<16x8xf32>
    %311 = tpu.matmul %309, %310, %cst_89 {dimension_numbers = #tpu.dot_dimension_numbers<[1], [0], [0], [1], [0, 0, 1, 1], [], []>} : vector<16x16xbf16>, vector<16x8xbf16>, vector<16x8xf32> -> vector<16x8xf32>
    %312 = vector.extract_strided_slice %243 {offsets = [16, 0], sizes = [8, 32], strides = [1, 1]} : vector<32x32xf32> to vector<8x32xf32>
    %313 = arith.truncf %311 : vector<16x8xf32> to vector<16x8xbf16>
    %314 = arith.truncf %312 : vector<8x32xf32> to vector<8x32xbf16>
    %cst_90 = arith.constant dense<0.000000e+00> : vector<16x32xf32>
    %315 = tpu.matmul %313, %314, %cst_90 {dimension_numbers = #tpu.dot_dimension_numbers<[1], [0], [0], [1], [0, 0, 1, 1], [], []>} : vector<16x8xbf16>, vector<8x32xbf16>, vector<16x32xf32> -> vector<16x32xf32>
    %316 = arith.addf %293, %315 : vector<16x32xf32>
    %317 = vector.extract_strided_slice %228 {offsets = [0, 24], sizes = [16, 8], strides = [1, 1]} : vector<16x32xf32> to vector<16x8xf32>
    %318 = vector.extract_strided_slice %235 {offsets = [0, 24], sizes = [16, 8], strides = [1, 1]} : vector<16x32xf32> to vector<16x8xf32>
    %cst_91 = arith.constant dense<0.000000e+00> : vector<16x16xf32>
    %319 = tpu.matmul %317, %318, %cst_91 {dimension_numbers = #tpu.dot_dimension_numbers<[1], [1], [0], [0], [0, 0, 1, 0], [], []>} : vector<16x8xf32>, vector<16x8xf32>, vector<16x16xf32> -> vector<16x16xf32>
    %320 = arith.addf %319, %29 : vector<16x16xf32>
    %cst_92 = arith.constant dense<0xFF800000> : vector<16xf32>
    %321 = vector.multi_reduction <maximumf>, %320, %cst_92 [1] : vector<16x16xf32> to vector<16xf32>
    %322 = vector.shape_cast %321 : vector<16xf32> to vector<16x1xf32>
    %323 = vector.broadcast %322 : vector<16x1xf32> to vector<16x16xf32>
    %324 = arith.subf %320, %323 : vector<16x16xf32>
    %325 = math.exp %324 : vector<16x16xf32>
    %cst_93 = arith.constant dense<0.000000e+00> : vector<16xf32>
    %326 = vector.multi_reduction <add>, %325, %cst_93 [1] : vector<16x16xf32> to vector<16xf32>
    %327 = vector.shape_cast %326 : vector<16xf32> to vector<16x1xf32>
    %328 = tpu.reciprocal %327 {approx = true} : vector<16x1xf32> -> vector<16x1xf32>
    %329 = vector.broadcast %328 : vector<16x1xf32> to vector<16x16xf32>
    %330 = arith.mulf %325, %329 : vector<16x16xf32>
    %331 = vector.extract_strided_slice %242 {offsets = [0, 24], sizes = [16, 8], strides = [1, 1]} : vector<16x32xf32> to vector<16x8xf32>
    %332 = arith.truncf %330 : vector<16x16xf32> to vector<16x16xbf16>
    %333 = arith.truncf %331 : vector<16x8xf32> to vector<16x8xbf16>
    %cst_94 = arith.constant dense<0.000000e+00> : vector<16x8xf32>
    %334 = tpu.matmul %332, %333, %cst_94 {dimension_numbers = #tpu.dot_dimension_numbers<[1], [0], [0], [1], [0, 0, 1, 1], [], []>} : vector<16x16xbf16>, vector<16x8xbf16>, vector<16x8xf32> -> vector<16x8xf32>
    %335 = vector.extract_strided_slice %243 {offsets = [24, 0], sizes = [8, 32], strides = [1, 1]} : vector<32x32xf32> to vector<8x32xf32>
    %336 = arith.truncf %334 : vector<16x8xf32> to vector<16x8xbf16>
    %337 = arith.truncf %335 : vector<8x32xf32> to vector<8x32xbf16>
    %cst_95 = arith.constant dense<0.000000e+00> : vector<16x32xf32>
    %338 = tpu.matmul %336, %337, %cst_95 {dimension_numbers = #tpu.dot_dimension_numbers<[1], [0], [0], [1], [0, 0, 1, 1], [], []>} : vector<16x8xbf16>, vector<8x32xbf16>, vector<16x32xf32> -> vector<16x32xf32>
    %339 = arith.addf %316, %338 : vector<16x32xf32>
    %340 = arith.addf %221, %339 : vector<16x32xf32>
    %c600 = arith.constant 600 : index
    %c0_96 = arith.constant 0 : index
    %341 = vector.load %arg2[%c600, %c0_96] : memref<672x128xf32, #tpu.memory_space<vmem>>, vector<1x32xf32>
    %c608 = arith.constant 608 : index
    %c0_97 = arith.constant 0 : index
    %342 = vector.load %arg2[%c608, %c0_97] : memref<672x128xf32, #tpu.memory_space<vmem>>, vector<1x32xf32>
    %cst_98 = arith.constant dense<0.000000e+00> : vector<16xf32>
    %343 = vector.multi_reduction <add>, %340, %cst_98 [1] : vector<16x32xf32> to vector<16xf32>
    %344 = vector.shape_cast %343 : vector<16xf32> to vector<16x1xf32>
    %cst_99 = arith.constant 3.200000e+01 : f32
    %345 = vector.broadcast %cst_99 : f32 to vector<16x1xf32>
    %346 = arith.divf %344, %345 : vector<16x1xf32>
    %347 = vector.broadcast %346 : vector<16x1xf32> to vector<16x32xf32>
    %348 = arith.subf %340, %347 : vector<16x32xf32>
    %349 = arith.mulf %348, %348 : vector<16x32xf32>
    %cst_100 = arith.constant dense<0.000000e+00> : vector<16xf32>
    %350 = vector.multi_reduction <add>, %349, %cst_100 [1] : vector<16x32xf32> to vector<16xf32>
    %351 = vector.shape_cast %350 : vector<16xf32> to vector<16x1xf32>
    %cst_101 = arith.constant 3.200000e+01 : f32
    %352 = vector.broadcast %cst_101 : f32 to vector<16x1xf32>
    %353 = arith.divf %351, %352 : vector<16x1xf32>
    %354 = vector.broadcast %346 : vector<16x1xf32> to vector<16x32xf32>
    %355 = arith.subf %340, %354 : vector<16x32xf32>
    %cst_102 = arith.constant 9.99999974E-6 : f32
    %356 = vector.broadcast %cst_102 : f32 to vector<16x1xf32>
    %357 = arith.addf %353, %356 : vector<16x1xf32>
    %358 = math.rsqrt %357 : vector<16x1xf32>
    %359 = vector.broadcast %358 : vector<16x1xf32> to vector<16x32xf32>
    %360 = arith.mulf %355, %359 : vector<16x32xf32>
    %361 = vector.broadcast %341 : vector<1x32xf32> to vector<16x32xf32>
    %362 = arith.mulf %360, %361 : vector<16x32xf32>
    %363 = vector.broadcast %342 : vector<1x32xf32> to vector<16x32xf32>
    %364 = arith.addf %362, %363 : vector<16x32xf32>
    %c488 = arith.constant 488 : index
    %c0_103 = arith.constant 0 : index
    %365 = vector.load %arg2[%c488, %c0_103] : memref<672x128xf32, #tpu.memory_space<vmem>>, vector<32x64xf32>
    %366 = arith.truncf %364 : vector<16x32xf32> to vector<16x32xbf16>
    %367 = arith.truncf %365 : vector<32x64xf32> to vector<32x64xbf16>
    %cst_104 = arith.constant dense<0.000000e+00> : vector<16x64xf32>
    %368 = tpu.matmul %366, %367, %cst_104 {dimension_numbers = #tpu.dot_dimension_numbers<[1], [0], [0], [1], [0, 0, 1, 1], [], []>} : vector<16x32xbf16>, vector<32x64xbf16>, vector<16x64xf32> -> vector<16x64xf32>
    %c520 = arith.constant 520 : index
    %c0_105 = arith.constant 0 : index
    %369 = vector.load %arg2[%c520, %c0_105] : memref<672x128xf32, #tpu.memory_space<vmem>>, vector<1x64xf32>
    %370 = vector.broadcast %369 : vector<1x64xf32> to vector<16x64xf32>
    %371 = arith.addf %368, %370 : vector<16x64xf32>
    %cst_106 = arith.constant 0.000000e+00 : f32
    %372 = vector.broadcast %cst_106 : f32 to vector<16x64xf32>
    %373 = arith.maximumf %371, %372 : vector<16x64xf32>
    %c528 = arith.constant 528 : index
    %c0_107 = arith.constant 0 : index
    %374 = vector.load %arg2[%c528, %c0_107] : memref<672x128xf32, #tpu.memory_space<vmem>>, vector<64x32xf32>
    %375 = arith.truncf %373 : vector<16x64xf32> to vector<16x64xbf16>
    %376 = arith.truncf %374 : vector<64x32xf32> to vector<64x32xbf16>
    %cst_108 = arith.constant dense<0.000000e+00> : vector<16x32xf32>
    %377 = tpu.matmul %375, %376, %cst_108 {dimension_numbers = #tpu.dot_dimension_numbers<[1], [0], [0], [1], [0, 0, 1, 1], [], []>} : vector<16x64xbf16>, vector<64x32xbf16>, vector<16x32xf32> -> vector<16x32xf32>
    %c592 = arith.constant 592 : index
    %c0_109 = arith.constant 0 : index
    %378 = vector.load %arg2[%c592, %c0_109] : memref<672x128xf32, #tpu.memory_space<vmem>>, vector<1x32xf32>
    %379 = vector.broadcast %378 : vector<1x32xf32> to vector<16x32xf32>
    %380 = arith.addf %377, %379 : vector<16x32xf32>
    %381 = arith.addf %364, %380 : vector<16x32xf32>
    %c616 = arith.constant 616 : index
    %c0_110 = arith.constant 0 : index
    %382 = vector.load %arg2[%c616, %c0_110] : memref<672x128xf32, #tpu.memory_space<vmem>>, vector<1x32xf32>
    %c624 = arith.constant 624 : index
    %c0_111 = arith.constant 0 : index
    %383 = vector.load %arg2[%c624, %c0_111] : memref<672x128xf32, #tpu.memory_space<vmem>>, vector<1x32xf32>
    %cst_112 = arith.constant dense<0.000000e+00> : vector<16xf32>
    %384 = vector.multi_reduction <add>, %381, %cst_112 [1] : vector<16x32xf32> to vector<16xf32>
    %385 = vector.shape_cast %384 : vector<16xf32> to vector<16x1xf32>
    %cst_113 = arith.constant 3.200000e+01 : f32
    %386 = vector.broadcast %cst_113 : f32 to vector<16x1xf32>
    %387 = arith.divf %385, %386 : vector<16x1xf32>
    %388 = vector.broadcast %387 : vector<16x1xf32> to vector<16x32xf32>
    %389 = arith.subf %381, %388 : vector<16x32xf32>
    %390 = arith.mulf %389, %389 : vector<16x32xf32>
    %cst_114 = arith.constant dense<0.000000e+00> : vector<16xf32>
    %391 = vector.multi_reduction <add>, %390, %cst_114 [1] : vector<16x32xf32> to vector<16xf32>
    %392 = vector.shape_cast %391 : vector<16xf32> to vector<16x1xf32>
    %cst_115 = arith.constant 3.200000e+01 : f32
    %393 = vector.broadcast %cst_115 : f32 to vector<16x1xf32>
    %394 = arith.divf %392, %393 : vector<16x1xf32>
    %395 = vector.broadcast %387 : vector<16x1xf32> to vector<16x32xf32>
    %396 = arith.subf %381, %395 : vector<16x32xf32>
    %cst_116 = arith.constant 9.99999974E-6 : f32
    %397 = vector.broadcast %cst_116 : f32 to vector<16x1xf32>
    %398 = arith.addf %394, %397 : vector<16x1xf32>
    %399 = math.rsqrt %398 : vector<16x1xf32>
    %400 = vector.broadcast %399 : vector<16x1xf32> to vector<16x32xf32>
    %401 = arith.mulf %396, %400 : vector<16x32xf32>
    %402 = vector.broadcast %382 : vector<1x32xf32> to vector<16x32xf32>
    %403 = arith.mulf %401, %402 : vector<16x32xf32>
    %404 = vector.broadcast %383 : vector<1x32xf32> to vector<16x32xf32>
    %405 = arith.addf %403, %404 : vector<16x32xf32>
    %406 = vector.extract_strided_slice %405 {offsets = [0, 0], sizes = [8, 32], strides = [1, 1]} : vector<16x32xf32> to vector<8x32xf32>
    %407 = vector.extract_strided_slice %405 {offsets = [8, 0], sizes = [8, 32], strides = [1, 1]} : vector<16x32xf32> to vector<8x32xf32>
    %408 = arith.maximumf %406, %407 : vector<8x32xf32>
    %c632 = arith.constant 632 : index
    %c0_117 = arith.constant 0 : index
    %409 = vector.load %arg2[%c632, %c0_117] : memref<672x128xf32, #tpu.memory_space<vmem>>, vector<32x5xf32>
    %410 = arith.truncf %408 : vector<8x32xf32> to vector<8x32xbf16>
    %411 = arith.truncf %409 : vector<32x5xf32> to vector<32x5xbf16>
    %cst_118 = arith.constant dense<0.000000e+00> : vector<8x5xf32>
    %412 = tpu.matmul %410, %411, %cst_118 {dimension_numbers = #tpu.dot_dimension_numbers<[1], [0], [0], [1], [0, 0, 1, 1], [], []>} : vector<8x32xbf16>, vector<32x5xbf16>, vector<8x5xf32> -> vector<8x5xf32>
    %c664 = arith.constant 664 : index
    %c0_119 = arith.constant 0 : index
    %413 = vector.load %arg2[%c664, %c0_119] : memref<672x128xf32, #tpu.memory_space<vmem>>, vector<1x5xf32>
    %414 = vector.broadcast %413 : vector<1x5xf32> to vector<8x5xf32>
    %415 = arith.addf %412, %414 : vector<8x5xf32>
    %c0_120 = arith.constant 0 : index
    %c0_121 = arith.constant 0 : index
    %416 = vector.load %arg3[%c0_120, %c0_121] : memref<8x5xf32, #tpu.memory_space<vmem>>, vector<8x5xf32>
    tpu.vector_store %arg3[%c0_120, %c0_121], %415 {strides = array<i32>} : memref<8x5xf32, #tpu.memory_space<vmem>>, vector<8x5xf32>,
    return
  }
  func.func @transform_0(%arg0: i32) -> (i32, i32) {
    %c0_i32 = arith.constant 0 : i32
    %c0_i32_0 = arith.constant 0 : i32
    %c0_i32_1 = arith.constant 0 : i32
    return %c0_i32, %c0_i32_0 : i32, i32
  }
  func.func @transform_1(%arg0: i32) -> (i32, i32) {
    %c0_i32 = arith.constant 0 : i32
    %c0_i32_0 = arith.constant 0 : i32
    %c0_i32_1 = arith.constant 0 : i32
    return %c0_i32, %c0_i32_0 : i32, i32
  }
  func.func @transform_2(%arg0: i32) -> (i32, i32) {
    %c0_i32 = arith.constant 0 : i32
    %c0_i32_0 = arith.constant 0 : i32
    %c0_i32_1 = arith.constant 0 : i32
    return %c0_i32, %c0_i32_0 : i32, i32
  }
}

</mosaic_0001>

<bundles_post_ra>
// kernel: transformer_classifier_forward.1
= control target key start
LH: loop header
LB: loop body
LE: loop exit
PB: predicated region body
PF: predicated region fallthrough
CT: control target
= control target key end

     0   :  { %7 = vsyncpa [#allocation3], 0  ;;  %s3712_s0 = inlined_call_operand.vmem [shape: f32[16,9], index: 0, kind: input, shape index: {}]   ;;  %s3713_s1 = inlined_call_operand.hbm [shape: f32[672,128], index: 1, kind: input, shape index: {}]   ;;  %s3714_s2 = inlined_call_operand.hbm [shape: f32[8,5], index: 2, kind: output, shape index: {}]  }
   0x1   :  { %8 = vsyncpa [#allocation4], 0  ;;  %s3289_s9 = smov [#allocation2]   ;;  %s3241_s13 = scalar_lea.hbm %s3713_s1, 10752 }
   0x2   :  { %s16_s10 = sshll.u32 %s3289_s9, 4  ;;  %p3242_p0 = scmp.ne.s32.totalorder %s3713_s1, %s3241_s13  ;;  %s17_s10 = int_to_ptr.vmem [resolvable:$true] %s16_s10 }
   0x3   :  { %p3245_p1 = scmp.lt.u32.totalorder %s3241_s13, %s3713_s1 }
   0x5   :  { %p3247_p2 = pnand %p3245_p1, %p3242_p0 }
   0x7   :  { %3250 = shalt.err (!%p3247_p2)
}
   0x8   :  { %s3251_s18 = scalar_lea.vmem %s17_s10, 10752  ;;  %p3256_p4 = scmp.lt.s32.totalorder %s17_s10, %s17_s10 }
   0x9   :  { %p3252_p3 = scmp.ne.s32.totalorder %s17_s10, %s3251_s18  ;;  %p3257_p5 = scmp.lt.s32.totalorder %s3251_s18, %s3251_s18 }
   0xb   :  { %p3258_p6 = por %p3257_p5, %p3256_p4 }
   0xd   :  { %p3259_p7 = pnand %p3258_p6, %p3252_p3 }
   0xf   :  { %3262 = shalt.err (!%p3259_p7)
}
  0x10   :  { %s3290_s19 = smov 128   ;;  %s3291_s20 = smov 8  }
  0x11   :  { %22 = dma.hbm_to_vmem [thread:$0]  %s3713_s1, 10752, %s17_s10, [#allocation3], %s3290_s19, %s3290_s19, %s3291_s20  }
  0x12   :  { %3285 = dma.done.wait [#allocation3], 10752  }
  0x13   :  { %3286 = vsyncadd [#allocation3], 4294956544  ;;  %v3292_v0 = vmov 0.0   ;;  %vm73_vm0 = vcmask 1043456   ;;  %vm3293_vm1 = vmmov 0   ;;  %vm74_vm2 = vcmask 1044480  }
  0x14   :  { %2818 = vmatprep.subr.bf16.mxu0 %v3292_v0  ;;  %2824 = vmatprep.subr.bf16.mxu1 %v3292_v0  ;;  %v3294_v1 = vmov 65535   ;;  %v60_v3 = vld [vmem:[#allocation2] sm:$0xff]  ;;  %v61_v4 = vld [vmem:[#allocation2 + $0x8] sm:$0x1]  ;;  %vm69_vm3 = vcmask 72704   ;;  %v121_v11 = vld [vmem:[#allocation2 + $0x18] sm:$0xff]  ;;  %v30_v62 = vlaneseq }
  0x15   :  { %2820 = vmatprep.mubr.msk.bf16.mxu0 %vm3293_vm1, %v3292_v0  ;;  %2828 = vmatprep.mubr.msk.bf16.mxu1 %vm3293_vm1, %v3292_v0  ;;  %v75_v2 = vsel %vm73_vm0, 4294967295, %v3294_v1  ;;  %v63_v6 = vpack.c.bf16 %v61_v4, %v60_v3  ;;  %v58_v7 = vld [vmem:[%s3712_s0] sm:$0xff]  ;;  %v59_v8 = vld [vmem:[%s3712_s0 + $0x8] sm:$0xff]  ;;  %v124_v18 = vld [vmem:[#allocation2 + $0x30] sm:$0xff]  ;;  %vm133_vm4 = vcmask 261120   ;;  %vm292_vm5 = vcmask 64512  }
  0x16   :  { %v76_v5 = vsel %vm74_vm2, %v75_v2, 0  ;;  %v62_v10 = vpack.c.bf16 %v59_v8, %v58_v7  ;;  %v122_v12 = vld [vmem:[#allocation2 + $0x20] sm:$0xff]  ;;  %v179_v15 = vld [vmem:[#allocation2 + $0x48] sm:$0xff]  ;;  %v180_v19 = vld [vmem:[#allocation2 + $0x50] sm:$0xff]  ;;  %v31_v63 = vand.u32 127, %v30_v62  ;;  %vm380_vm11 = vcmask 130048  }
  0x17   :  { %v78_v9 = vand.u32 %v76_v5, %v63_v6  ;;  %v178_v13 = vld [vmem:[#allocation2 + $0x40] sm:$0xff]  ;;  %v126_v14 = vpack.c.bf16 %v122_v12, %v121_v11  ;;  %v123_v17 = vld [vmem:[#allocation2 + $0x28] sm:$0xff]  ;;  %v181_v21 = vld [vmem:[#allocation2 + $0x58] sm:$0xff]  ;;  %v3295_v1 = vmov -1e+30   ;;  %s3296_s0 = smov 120  }
  0x18   :  { %v182_v16 = vpack.c.bf16 %v179_v15, %v178_v13  ;;  %v127_v20 = vpack.c.bf16 %v124_v18, %v123_v17  ;;  %v183_v22 = vpack.c.bf16 %v181_v21, %v180_v19  ;;  %v2633_v23 = vld [vmem:[#allocation2 + $0x10] ss:$0 sm:$0xff]  ;;  %v230_v26 = vld [vmem:[#allocation2 + $0x68] sm:$0xff]  ;;  %v232_v34 = vld [vmem:[#allocation2 + $0x78] sm:$0xff]  ;;  %vm49_vm7 = vcmp.ge.s32.totalorder %v31_v63, 8  ;;  %s3297_s26 = smov 112  }
  0x19   :  { %2819 = vmatpush3.bf16.msra.mxu0 %v78_v9  ;;  %2825 = vmatpush3.bf16.msra.mxu1 %v126_v14  ;;  %v231_v27 = vld [vmem:[#allocation2 + $0x70] sm:$0xff]  ;;  %v233_v35 = vld [vmem:[#allocation2 + $0x80] sm:$0xff]  ;;  %v2635_v37 = vld [vmem:[#allocation2 + $0x38] ss:$0 sm:$0xff]  ;;  %vm50_vm8 = vcmp.lt.s32.totalorder %v31_v63, 16  ;;  %vm39_vm9 = vcmp.lt.s32.totalorder %v31_v63, 8 }
  0x1a   :  { %2832 = vmatprep.subr.bf16.mxu0 %v3292_v0  ;;  %2826 = vmatprep.subr.bf16.mxu1 %v3292_v0  ;;  %v234_v32 = vpack.c.bf16 %v231_v27, %v230_v26  ;;  %v235_v36 = vpack.c.bf16 %v233_v35, %v232_v34  ;;  %v2637_v39 = vld [vmem:[#allocation2 + $0x60] ss:$0 sm:$0xff]  ;;  %vm3367_vm6 = vmpackc.low %vm292_vm5, %vm292_vm5  ;;  %v2639_v53 = vld [vmem:[#allocation2 + $0x88] ss:$0 sm:$0xff]  ;;  %v3387_v2 = vsel %vm39_vm9, 0.0, %v3295_v1  ;;  %s3298_s27 = smov 104  }
  0x1b   :  { %vm51_vm10 = vmand %vm49_vm7, %vm50_vm8  ;;  %v282_v35 = vld [vmem:[#allocation2 + $0x90] sm:$0xff]  ;;  %vm1256_vm12 = vcmask 523264   ;;  %s3299_s28 = smov [#allocation5]   ;;  %vm2616_vm13 = vcmask 39936  }
  0x1c   :  { %2821 = vmatmul.mubr.msk.bf16.vlgmr.msra.gmra.mrb[0].mxu0 %vm69_vm3, %v62_v10  ;;  %v3389_v4 = vsel %vm51_vm10, 0.0, %v3295_v1  ;;  %s2624_s29 = sshll.u32 %s3299_s28, 4  ;;  %s2625_s29 = int_to_ptr.vmem [resolvable:$true] %s2624_s29 }
  0x1d   :  { %2836 = vmatprep.mubr.msk.bf16.mxu0 %vm3293_vm1, %v3292_v0  ;;  %2833 = vmatpush3.bf16.msra.mxu0 %v182_v16  ;;  %s3263_s30 = scalar_lea.vmem %s2625_s29, 128  ;;  %p3268_p9 = scmp.lt.s32.totalorder %s2625_s29, %s2625_s29 }
  0x1e   :  { %2834 = vmatprep.subr.bf16.mxu0 %v3292_v0  ;;  %2827 = vmatpush3.bf16.msra.mxu1 %v127_v20  ;;  %p3264_p8 = scmp.ne.s32.totalorder %s2625_s29, %s3263_s30  ;;  %p3269_p10 = scmp.lt.s32.totalorder %s3263_s30, %s3263_s30 }
  0x1f   :  { %2840 = vmatprep.subr.bf16.mxu1 %v3292_v0 }
  0x20   :  { %p3270_p11 = por %p3269_p10, %p3268_p9 }
  0x21   :  { %2835 = vmatpush3.bf16.msra.mxu0 %v183_v22 }
  0x22   :  { %p3271_p12 = pnand %p3270_p11, %p3264_p8 }
  0xef   :  { %v114_v24 = vpop.f32.mrb[0].mxu0 }
  0xf0   :  { %v2822_v25 = vpop.f32.mrb[1].mxu0  ;;  %v3346_v29 = vadd.f32 %v2633_v23, %v114_v24 }
  0xf1   :  { %v117_v28 = vpop.f32.mrb[2].mxu0 }
  0xf2   :  { %v3348_v30 = vadd.f32 %v2633_v23, %v117_v28  ;;  %v2823_v31 = vpop.f32.mrb[3].mxu0 }
  0xf4   :  { %v125_v33 = vpack.c.bf16 %v3348_v30, %v3346_v29 }
  0xf6   :  { %2829 = vmatmul.mubr.msk.bf16.vlgmr.msra.gmra.mrb[0].mxu1 %vm133_vm4, %v125_v33  ;;  %2837 = vmatmul.mubr.msk.bf16.vlgmr.msra.gmra.mrb[4].mxu0 %vm133_vm4, %v125_v33 }
  0xf7   :  { %2841 = vmatpush3.bf16.msra.mxu1 %v234_v32  ;;  %2844 = vmatprep.mubr.msk.bf16.mxu1 %vm3293_vm1, %v3292_v0 }
  0xf8   :  { %2842 = vmatprep.subr.bf16.mxu1 %v3292_v0 }
  0xfb   :  { %2843 = vmatpush3.bf16.msra.mxu1 %v235_v36  ;;  %v450_v36 = vpack.c.bf16 %v282_v35, %v282_v35 }
  0xfc   :  { %2861 = vmatprep.subr.bf16.mxu1 %v3292_v0 }
  0xfe   :  { %2845 = vmatmul.mubr.msk.bf16.vlgmr.msra.gmra.mrb[4].mxu1 %vm133_vm4, %v125_v33 }
  0xff   :  { %2863 = vmatprep.mubr.msk.bf16.mxu1 %vm3293_vm1, %v3292_v0 }
 0x1c9   :  { %v171_v38 = vpop.f32.mrb[0].mxu1  ;;  %v223_v40 = vpop.f32.mrb[4].mxu0 }
 0x1ca   :  { %v3361_v41 = vadd.f32 %v2635_v37, %v171_v38  ;;  %v2830_v42 = vpop.f32.mrb[1].mxu1  ;;  %v2838_v43 = vpop.f32.mrb[5].mxu0  ;;  %v224_v46 = vadd.f32 %v2637_v39, %v223_v40 }
 0x1cb   :  { %v174_v44 = vpop.f32.mrb[2].mxu1  ;;  %v226_v45 = vpop.f32.mrb[6].mxu0 }
 0x1cc   :  { %v227_v47 = vadd.f32 %v2637_v39, %v226_v45  ;;  %v2831_v48 = vpop.f32.mrb[3].mxu1  ;;  %v2839_v49 = vpop.f32.mrb[7].mxu0  ;;  %2852 = vmatprep.mubr.msk.f32.mxu0 %vm292_vm5, %v3361_v41  ;;  %v3378_v60 = vadd.f32 %v2635_v37, %v174_v44  ;;  %v455_v37 = vsel %vm73_vm0, %v450_v36, 0 }
 0x1cd   :  { %2862 = vmatpush3.bf16.msra.mxu1 %v455_v37 }
 0x1ce   :  { %v3072_v51 = vpack.c.bf16 %v227_v47, %v224_v46  ;;  %v3371_v52 = vpack.i.bf16 %v227_v47, %v224_v46  ;;  %2874 = vmatprep.subr.bf16.mxu1 %v3292_v0 }
 0x1d0   :  { %3074 = vmatprep.subr.msk.bf16.mxu0 %vm3367_vm6, %v3072_v51 }
 0x1d1   :  { %v275_v54 = vpop.f32.mrb[4].mxu1  ;;  %3077 = vmatpush3.bf16.xpose.msk.msra.mxu0 %vm3367_vm6, %v3072_v51 }
 0x1d2   :  { %v2846_v55 = vpop.f32.mrb[5].mxu1  ;;  %2855 = vmatprep.subr.bf16.mxu0 %v3292_v0  ;;  %v276_v57 = vadd.f32 %v2639_v53, %v275_v54 }
 0x1d3   :  { %v278_v56 = vpop.f32.mrb[6].mxu1 }
 0x1d4   :  { %v279_v58 = vadd.f32 %v2639_v53, %v278_v56  ;;  %v2847_v59 = vpop.f32.mrb[7].mxu1 }
 0x1d6   :  { %v3380_v61 = vpack.c.bf16 %v279_v58, %v276_v57 }
 0x1d8   :  { %2853 = vmatmul.mubr.msk.f32.vlgmr.msra.gmra.mrb[8].mxu0 %vm292_vm5, %v3378_v60 }
 0x1d9   :  { %2856 = vmatpush3.bf16.msra.mxu0 %v3380_v61  ;;  %2857 = vmatprep.mubr.msk.bf16.mxu0 %vm3293_vm1, %v3292_v0 }
 0x2ab   :  { %v2854_v3 = vpop.f32.mrb[8].mxu0 }
 0x2ac   :  { %v371_v5 = vpop.f32.mrb[9].mxu0  ;;  %v377_v7 = vadd.f32 %v2854_v3, %v3389_v4 }
 0x2ad   :  { %v372_v6 = vadd.f32 %v371_v5, %v3387_v2 }
 0x2ae   :  { %v384_v9 = vsel %vm380_vm11, %v377_v7, -inf }
 0x2af   :  { %v381_v8 = vsel %vm380_vm11, %v372_v6, -inf }
 0x2b0   :  { %382 = vmax.xlane.f32.xlu0 %v381_v8 }
 0x2b4   :  { %385 = vmax.xlane.f32.xlu0 %v384_v9 }
 0x2ca   :  { %3132 = vrot.lane.b32.xlu0 %v3371_v52, %s3296_s0 }
 0x33d   :  { %v383_v10 = vpop.xlane.xlu0 %382 }
 0x33e   :  { %v387_v11 = vsub.f32 %v372_v6, %v383_v10 }
 0x340   :  { %v389_v14 = vmul.f32 1.442695, %v387_v11 }
 0x341   :  { %v386_v12 = vpop.xlane.xlu0 %385 }
 0x342   :  { %v388_v13 = vsub.f32 %v377_v7, %v386_v12 }
 0x344   :  { %v391_v15 = vmul.f32 1.442695, %v388_v13 }
 0x345   :  { %v3133_v16 = vpop.permute.xlu0 %3132 }
 0x346   :  { %3161 = vpow2.f32 %v391_v15  ;;  %v3135_v17 = vunpack.i.h.bf16 %v3133_v16  ;;  %v3134_v18 = vunpack.i.l.bf16 %v3133_v16 }
 0x347   :  { %3163 = vpow2.f32 %v389_v14 }
 0x348   :  { %v3078_v19 = vpack.c.bf16 %v3135_v17, %v3134_v18 }
 0x34a   :  { %3080 = vmatprep.subr.msk.bf16.mxu0 %vm3367_vm6, %v3078_v19 }
 0x350   :  { %v3162_v20 = vpop.eup %3161 }
 0x351   :  { %v396_v21 = vsel %vm380_vm11, %v3162_v20, 0.0  ;;  %v3164_v22 = vpop.eup %3163 }
 0x352   :  { %397 = vadd.xlane.f32.xlu1 %v396_v21  ;;  %v393_v23 = vsel %vm380_vm11, %v3164_v22, 0.0  ;;  %v283_v21 = vld [vmem:[#allocation2 + $0x98] sm:$0xff] }
 0x356   :  { %394 = vadd.xlane.f32.xlu1 %v393_v23 }
 0x367   :  { %500 = vrot.lane.b32.xlu1 %v3361_v41, %s3296_s0 }
 0x36b   :  { %502 = vrot.lane.b32.xlu1 %v3378_v60, %s3296_s0 }
 0x3df   :  { %v398_v24 = vpop.xlane.xlu1 %397 }
 0x3e0   :  { %3165 = vrcp.f32 %v398_v24 }
 0x3e3   :  { %v395_v25 = vpop.xlane.xlu1 %394 }
 0x3e4   :  { %3167 = vrcp.f32 %v395_v25 }
 0x3e7   :  { %v501_v33 = vpop.permute.xlu1 %500 }
 0x3ea   :  { %v3166_v26 = vpop.eup %3165 }
 0x3eb   :  { %v402_v28 = vmul.f32 %v3166_v26, %v3162_v20  ;;  %v503_v34 = vpop.permute.xlu1 %502 }
 0x3ee   :  { %v3168_v27 = vpop.eup %3167 }
 0x3ef   :  { %v401_v31 = vmul.f32 %v3168_v27, %v3164_v22  ;;  %v663_v22 = vpack.c.bf16 %v283_v21, %v283_v21 }
 0x3f1   :  { %v403_v32 = vpack.c.bf16 %v402_v28, %v401_v31  ;;  %v668_v23 = vsel %vm73_vm0, %v663_v22, 0 }
 0x3f3   :  { %2858 = vmatmul.mubr.msk.bf16.vlgmr.msra.gmra.mrb[12].mxu0 %vm380_vm11, %v403_v32 }
 0x3f4   :  { %3083 = vmatpush3.bf16.xpose.msk.msra.mxu0 %vm3367_vm6, %v3078_v19  ;;  %2871 = vmatprep.mubr.msk.f32.mxu0 %vm292_vm5, %v501_v33 }
 0x3f5   :  { %2880 = vmatprep.subr.bf16.mxu0 %v3292_v0 }
 0x3fb   :  { %2872 = vmatmul.mubr.msk.f32.vlgmr.msra.gmra.mrb[10].mxu0 %vm292_vm5, %v503_v34 }
 0x3fc   :  { %2882 = vmatprep.mubr.msk.bf16.mxu0 %vm3293_vm1, %v3292_v0  ;;  %2881 = vmatpush3.bf16.msra.mxu0 %v668_v23 }
 0x3fd   :  { %2893 = vmatprep.subr.bf16.mxu0 %v3292_v0 }
 0x4c6   :  { %v442_v38 = vpop.f32.mrb[12].mxu0 }
 0x4c7   :  { %v2859_v39 = vpop.f32.mrb[13].mxu0 }
 0x4c8   :  { %v445_v40 = vpop.f32.mrb[14].mxu0 }
 0x4c9   :  { %v449_v42 = vpack.c.bf16 %v445_v40, %v442_v38  ;;  %v2860_v43 = vpop.f32.mrb[15].mxu0 }
 0x4cb   :  { %2864 = vmatmul.mubr.msk.bf16.vlgmr.msra.gmra.mrb[8].mxu1 %vm292_vm5, %v449_v42 }
 0x4cc   :  { %2876 = vmatprep.mubr.msk.bf16.mxu1 %vm3293_vm1, %v3292_v0 }
 0x4ce   :  { %v2873_v44 = vpop.f32.mrb[10].mxu0 }
 0x4cf   :  { %v588_v45 = vadd.f32 %v2873_v44, %v3389_v4  ;;  %v582_v46 = vpop.f32.mrb[11].mxu0 }
 0x4d0   :  { %v583_v47 = vadd.f32 %v582_v46, %v3387_v2 }
 0x4d1   :  { %v594_v48 = vsel %vm380_vm11, %v588_v45, -inf }
 0x4d2   :  { %595 = vmax.xlane.f32.xlu0 %v594_v48  ;;  %v591_v49 = vsel %vm380_vm11, %v583_v47, -inf }
 0x4d3   :  { %592 = vmax.xlane.f32.xlu1 %v591_v49 }
 0x4e4   :  { %615 = vrot.lane.b32.xlu1 %v3380_v61, %s3296_s0 }
 0x4e8   :  { %713 = vrot.lane.b32.xlu1 %v3361_v41, %s3297_s26 }
 0x4ec   :  { %715 = vrot.lane.b32.xlu1 %v3378_v60, %s3297_s26 }
 0x55f   :  { %v596_v51 = vpop.xlane.xlu0 %595 }
 0x560   :  { %v598_v53 = vsub.f32 %v588_v45, %v596_v51  ;;  %v593_v54 = vpop.xlane.xlu1 %592 }
 0x561   :  { %v597_v55 = vsub.f32 %v583_v47, %v593_v54 }
 0x562   :  { %v601_v56 = vmul.f32 1.442695, %v598_v53 }
 0x563   :  { %v599_v57 = vmul.f32 1.442695, %v597_v55 }
 0x564   :  { %3169 = vpow2.f32 %v601_v56  ;;  %v616_v58 = vpop.permute.xlu1 %615 }
 0x565   :  { %2875 = vmatpush3.bf16.msra.mxu1 %v616_v58  ;;  %3171 = vpow2.f32 %v599_v57 }
 0x568   :  { %v714_v19 = vpop.permute.xlu1 %713 }
 0x56c   :  { %v716_v20 = vpop.permute.xlu1 %715 }
 0x56e   :  { %v3170_v59 = vpop.eup %3169 }
 0x56f   :  { %v606_v62 = vsel %vm380_vm11, %v3170_v59, 0.0  ;;  %v3172_v63 = vpop.eup %3171 }
 0x570   :  { %607 = vadd.xlane.f32.xlu0 %v606_v62  ;;  %v603_v1 = vsel %vm380_vm11, %v3172_v63, 0.0 }
 0x574   :  { %604 = vadd.xlane.f32.xlu0 %v603_v1 }
 0x58a   :  { %3137 = vrot.lane.b32.xlu0 %v3371_v52, %s3297_s26 }
 0x59e   :  { %v3432_v3 = vpop.f32.mrb[8].mxu1 }
 0x59f   :  { %v2865_v5 = vpop.f32.mrb[9].mxu1 }
 0x5a0   :  { %v3434_v6 = vpop.f32.mrb[10].mxu1 }
 0x5a1   :  { %v2866_v7 = vpop.f32.mrb[11].mxu1 }
 0x5fd   :  { %v608_v8 = vpop.xlane.xlu0 %607 }
 0x5fe   :  { %3173 = vrcp.f32 %v608_v8 }
 0x601   :  { %v605_v9 = vpop.xlane.xlu0 %604 }
 0x602   :  { %3175 = vrcp.f32 %v605_v9 }
 0x605   :  { %v3138_v10 = vpop.permute.xlu0 %3137 }
 0x606   :  { %v3140_v11 = vunpack.i.h.bf16 %v3138_v10  ;;  %v3139_v12 = vunpack.i.l.bf16 %v3138_v10 }
 0x608   :  { %v3084_v13 = vpack.c.bf16 %v3140_v11, %v3139_v12  ;;  %v3174_v14 = vpop.eup %3173  ;;  %v284_v11 = vld [vmem:[#allocation2 + $0xa0] sm:$0xff] }
 0x609   :  { %v612_v16 = vmul.f32 %v3174_v14, %v3170_v59  ;;  %v875_v12 = vpack.c.bf16 %v284_v11, %v284_v11 }
 0x60a   :  { %3086 = vmatprep.subr.msk.bf16.mxu1 %vm3367_vm6, %v3084_v13 }
 0x60c   :  { %v3176_v15 = vpop.eup %3175 }
 0x60d   :  { %v611_v17 = vmul.f32 %v3176_v15, %v3172_v63 }
 0x60f   :  { %v613_v18 = vpack.c.bf16 %v612_v16, %v611_v17 }
 0x611   :  { %2877 = vmatmul.mubr.msk.bf16.vlgmr.msra.gmra.mrb[12].mxu1 %vm380_vm11, %v613_v18 }
 0x612   :  { %3089 = vmatpush3.bf16.xpose.msk.msra.mxu1 %vm3367_vm6, %v3084_v13  ;;  %2890 = vmatprep.mubr.msk.f32.mxu1 %vm292_vm5, %v714_v19  ;;  %v880_v13 = vsel %vm73_vm0, %v875_v12, 0 }
 0x613   :  { %2899 = vmatprep.subr.bf16.mxu1 %v3292_v0 }
 0x619   :  { %2891 = vmatmul.mubr.msk.f32.vlgmr.msra.gmra.mrb[16].mxu1 %vm292_vm5, %v716_v20 }
 0x61a   :  { %2901 = vmatprep.mubr.msk.bf16.mxu1 %vm3293_vm1, %v3292_v0  ;;  %2900 = vmatpush3.bf16.msra.mxu1 %v880_v13 }
 0x61b   :  { %2912 = vmatprep.subr.bf16.mxu1 %v3292_v0 }
 0x6e4   :  { %v655_v24 = vpop.f32.mrb[12].mxu1 }
 0x6e5   :  { %v2878_v25 = vpop.f32.mrb[13].mxu1 }
 0x6e6   :  { %v658_v26 = vpop.f32.mrb[14].mxu1 }
 0x6e7   :  { %v662_v27 = vpack.c.bf16 %v658_v26, %v655_v24  ;;  %v2879_v28 = vpop.f32.mrb[15].mxu1 }
 0x6e9   :  { %2883 = vmatmul.mubr.msk.bf16.vlgmr.msra.gmra.mrb[16].mxu0 %vm292_vm5, %v662_v27 }
 0x6ea   :  { %2895 = vmatprep.mubr.msk.bf16.mxu0 %vm3293_vm1, %v3292_v0 }
 0x6ec   :  { %v2892_v31 = vpop.f32.mrb[16].mxu1 }
 0x6ed   :  { %v801_v32 = vadd.f32 %v2892_v31, %v3389_v4  ;;  %v795_v33 = vpop.f32.mrb[17].mxu1 }
 0x6ee   :  { %v796_v34 = vadd.f32 %v795_v33, %v3387_v2 }
 0x6ef   :  { %v807_v35 = vsel %vm380_vm11, %v801_v32, -inf }
 0x6f0   :  { %808 = vmax.xlane.f32.xlu0 %v807_v35  ;;  %v804_v36 = vsel %vm380_vm11, %v796_v34, -inf }
 0x6f1   :  { %805 = vmax.xlane.f32.xlu1 %v804_v36 }
 0x702   :  { %827 = vrot.lane.b32.xlu1 %v3380_v61, %s3297_s26 }
 0x706   :  { %925 = vrot.lane.b32.xlu1 %v3361_v41, %s3298_s27 }
 0x70a   :  { %927 = vrot.lane.b32.xlu1 %v3378_v60, %s3298_s27  ;;  %v2641_v60 = vld [vmem:[#allocation2 + $0xb0] ss:$0 sm:$0xff] }
 0x70b   :  { %v498_v48 = vadd.f32 %v2641_v60, %v3432_v3  ;;  %v499_v51 = vadd.f32 %v2641_v60, %v3434_v6 }
 0x77d   :  { %v809_v37 = vpop.xlane.xlu0 %808 }
 0x77e   :  { %v811_v38 = vsub.f32 %v801_v32, %v809_v37  ;;  %v806_v39 = vpop.xlane.xlu1 %805 }
 0x77f   :  { %v810_v40 = vsub.f32 %v796_v34, %v806_v39 }
 0x780   :  { %v814_v42 = vmul.f32 1.442695, %v811_v38 }
 0x781   :  { %v812_v43 = vmul.f32 1.442695, %v810_v40 }
 0x782   :  { %3177 = vpow2.f32 %v814_v42  ;;  %v828_v44 = vpop.permute.xlu1 %827 }
 0x783   :  { %2894 = vmatpush3.bf16.msra.mxu0 %v828_v44  ;;  %3179 = vpow2.f32 %v812_v43 }
 0x786   :  { %v926_v9 = vpop.permute.xlu1 %925 }
 0x78a   :  { %v928_v10 = vpop.permute.xlu1 %927 }
 0x78c   :  { %v3178_v45 = vpop.eup %3177 }
 0x78d   :  { %v819_v46 = vsel %vm380_vm11, %v3178_v45, 0.0  ;;  %v3180_v47 = vpop.eup %3179 }
 0x78e   :  { %820 = vadd.xlane.f32.xlu0 %v819_v46  ;;  %v816_v41 = vsel %vm380_vm11, %v3180_v47, 0.0 }
 0x792   :  { %817 = vadd.xlane.f32.xlu0 %v816_v41 }
 0x7a8   :  { %3142 = vrot.lane.b32.xlu0 %v3371_v52, %s3298_s27 }
 0x7bc   :  { %v704_v49 = vpop.f32.mrb[16].mxu0 }
 0x7bd   :  { %v3467_v53 = vadd.f32 %v704_v49, %v498_v48  ;;  %v2884_v54 = vpop.f32.mrb[17].mxu0  ;;  %v285_v49 = vld [vmem:[#allocation2 + $0xa8] sm:$0xff] }
 0x7be   :  { %v707_v55 = vpop.f32.mrb[18].mxu0 }
 0x7bf   :  { %v3469_v56 = vadd.f32 %v707_v55, %v499_v51  ;;  %v2885_v57 = vpop.f32.mrb[19].mxu0  ;;  %v1087_v51 = vpack.c.bf16 %v285_v49, %v285_v49  ;;  %v1244_v49 = vld [vmem:[#allocation2 + $0x110] sm:$0xff] }
 0x81b   :  { %v821_v58 = vpop.xlane.xlu0 %820 }
 0x81c   :  { %3181 = vrcp.f32 %v821_v58 }
 0x81f   :  { %v818_v59 = vpop.xlane.xlu0 %817 }
 0x820   :  { %3183 = vrcp.f32 %v818_v59 }
 0x823   :  { %v3143_v62 = vpop.permute.xlu0 %3142 }
 0x824   :  { %v3145_v63 = vunpack.i.h.bf16 %v3143_v62  ;;  %v3144_v52 = vunpack.i.l.bf16 %v3143_v62 }
 0x826   :  { %v3090_v1 = vpack.c.bf16 %v3145_v63, %v3144_v52  ;;  %v3182_v5 = vpop.eup %3181 }
 0x827   :  { %v825_v6 = vmul.f32 %v3182_v5, %v3178_v45 }
 0x828   :  { %3092 = vmatprep.subr.msk.bf16.mxu0 %vm3367_vm6, %v3090_v1 }
 0x82a   :  { %v3184_v3 = vpop.eup %3183 }
 0x82b   :  { %v824_v7 = vmul.f32 %v3184_v3, %v3180_v47 }
 0x82d   :  { %v826_v8 = vpack.c.bf16 %v825_v6, %v824_v7 }
 0x82f   :  { %2896 = vmatmul.mubr.msk.bf16.vlgmr.msra.gmra.mrb[20].mxu0 %vm380_vm11, %v826_v8 }
 0x830   :  { %3095 = vmatpush3.bf16.xpose.msk.msra.mxu0 %vm3367_vm6, %v3090_v1  ;;  %2909 = vmatprep.mubr.msk.f32.mxu0 %vm292_vm5, %v926_v9 }
 0x831   :  { %2918 = vmatprep.subr.bf16.mxu0 %v3292_v0 }
 0x837   :  { %2910 = vmatmul.mubr.msk.f32.vlgmr.msra.gmra.mrb[24].mxu0 %vm292_vm5, %v928_v10 }
 0x838   :  { %2920 = vmatprep.mubr.msk.bf16.mxu0 %vm3293_vm1, %v3292_v0 }
 0x902   :  { %v867_v14 = vpop.f32.mrb[20].mxu0 }
 0x903   :  { %v2897_v15 = vpop.f32.mrb[21].mxu0 }
 0x904   :  { %v870_v16 = vpop.f32.mrb[22].mxu0 }
 0x905   :  { %v874_v17 = vpack.c.bf16 %v870_v16, %v867_v14  ;;  %v2898_v18 = vpop.f32.mrb[23].mxu0 }
 0x906   :  { %v1180_v18 = vld [vmem:[#allocation2 + $0xb8] sm:$0xff] }
 0x907   :  { %2902 = vmatmul.mubr.msk.bf16.vlgmr.msra.gmra.mrb[20].mxu1 %vm292_vm5, %v874_v17 }
 0x908   :  { %2914 = vmatprep.mubr.msk.bf16.mxu1 %vm3293_vm1, %v3292_v0 }
 0x90a   :  { %v2911_v19 = vpop.f32.mrb[24].mxu0 }
 0x90b   :  { %v1013_v20 = vadd.f32 %v2911_v19, %v3389_v4  ;;  %v1007_v21 = vpop.f32.mrb[25].mxu0 }
 0x90c   :  { %v1008_v22 = vadd.f32 %v1007_v21, %v3387_v2  ;;  %v1183_v21 = vld [vmem:[#allocation2 + $0xd0] sm:$0xff] }
 0x90d   :  { %v1019_v23 = vsel %vm380_vm11, %v1013_v20, -inf }
 0x90e   :  { %1020 = vmax.xlane.f32.xlu0 %v1019_v23  ;;  %v1016_v24 = vsel %vm380_vm11, %v1008_v22, -inf  ;;  %v1238_v23 = vld [vmem:[#allocation2 + $0xe0] sm:$0xff] }
 0x90f   :  { %1017 = vmax.xlane.f32.xlu1 %v1016_v24  ;;  %v1239_v24 = vld [vmem:[#allocation2 + $0xe8] sm:$0xff] }
 0x920   :  { %1039 = vrot.lane.b32.xlu1 %v3380_v61, %s3298_s27 }
 0x99b   :  { %v1021_v25 = vpop.xlane.xlu0 %1020 }
 0x99c   :  { %v1023_v26 = vsub.f32 %v1013_v20, %v1021_v25  ;;  %v1018_v27 = vpop.xlane.xlu1 %1017  ;;  %v1182_v20 = vld [vmem:[#allocation2 + $0xc8] sm:$0xff]  ;;  %v1240_v25 = vld [vmem:[#allocation2 + $0xf0] sm:$0xff] }
 0x99d   :  { %v1022_v28 = vsub.f32 %v1008_v22, %v1018_v27  ;;  %v1186_v22 = vpack.c.bf16 %v1183_v21, %v1182_v20  ;;  %v1241_v27 = vld [vmem:[#allocation2 + $0xf8] sm:$0xff] }
 0x99e   :  { %v1026_v31 = vmul.f32 1.442695, %v1023_v26  ;;  %v1247_v26 = vpack.c.bf16 %v1239_v24, %v1238_v23  ;;  %v1343_v23 = vld [vmem:[#allocation2 + $0x148] sm:$0xff]  ;;  %v1344_v24 = vld [vmem:[#allocation2 + $0x150] sm:$0xff] }
 0x99f   :  { %v1024_v32 = vmul.f32 1.442695, %v1022_v28  ;;  %v1248_v28 = vpack.c.bf16 %v1241_v27, %v1240_v25  ;;  %v1451_v25 = vld [vmem:[#allocation2 + $0x198] sm:$0xff]  ;;  %v1452_v27 = vld [vmem:[#allocation2 + $0x1a0] sm:$0xff] }
 0x9a0   :  { %v1040_v33 = vpop.permute.xlu1 %1039 }
 0x9a1   :  { %3185 = vpow2.f32 %v1024_v32  ;;  %2913 = vmatpush3.bf16.msra.mxu1 %v1040_v33 }
 0x9a2   :  { %2924 = vmatprep.subr.bf16.mxu1 %v3292_v0  ;;  %3187 = vpow2.f32 %v1026_v31 }
 0x9ab   :  { %v3186_v34 = vpop.eup %3185 }
 0x9ac   :  { %v1028_v35 = vsel %vm380_vm11, %v3186_v34, 0.0  ;;  %v3188_v36 = vpop.eup %3187 }
 0x9ad   :  { %1029 = vadd.xlane.f32.xlu0 %v1028_v35  ;;  %v1031_v37 = vsel %vm380_vm11, %v3188_v36, 0.0 }
 0x9b1   :  { %1032 = vadd.xlane.f32.xlu0 %v1031_v37 }
 0x9da   :  { %v916_v61 = vpop.f32.mrb[20].mxu1 }
 0x9db   :  { %v923_v38 = vadd.f32 %v916_v61, %v3467_v53  ;;  %v2903_v39 = vpop.f32.mrb[21].mxu1  ;;  %v1092_v53 = vsel %vm73_vm0, %v1087_v51, 0  ;;  %v1245_v51 = vld [vmem:[#allocation2 + $0x118] sm:$0xff] }
 0x9dc   :  { %v919_v40 = vpop.f32.mrb[22].mxu1  ;;  %2919 = vmatpush3.bf16.msra.mxu0 %v1092_v53  ;;  %v1250_v53 = vpack.c.bf16 %v1245_v51, %v1244_v49  ;;  %v1399_v49 = vld [vmem:[#allocation2 + $0x170] sm:$0xff]  ;;  %v1400_v51 = vld [vmem:[#allocation2 + $0x178] sm:$0xff] }
 0x9dd   :  { %v924_v42 = vadd.f32 %v919_v40, %v3469_v56  ;;  %v2904_v43 = vpop.f32.mrb[23].mxu1  ;;  %2932 = vmatprep.subr.bf16.mxu0 %v3292_v0 }
 0x9de   :  { %v2667_v43 = vld [vmem:[#allocation2 + $0x130] ss:$0 sm:$0xff] }
 0xa3a   :  { %v1030_v44 = vpop.xlane.xlu0 %1029 }
 0xa3b   :  { %3189 = vrcp.f32 %v1030_v44 }
 0xa3e   :  { %v1033_v45 = vpop.xlane.xlu0 %1032 }
 0xa3f   :  { %3191 = vrcp.f32 %v1033_v45 }
 0xa45   :  { %v3190_v46 = vpop.eup %3189 }
 0xa46   :  { %v1036_v41 = vmul.f32 %v3190_v46, %v3186_v34 }
 0xa49   :  { %v3192_v47 = vpop.eup %3191 }
 0xa4a   :  { %v1037_v60 = vmul.f32 %v3192_v47, %v3188_v36 }
 0xa4c   :  { %v1038_v48 = vpack.c.bf16 %v1037_v60, %v1036_v41  ;;  %v1242_v41 = vld [vmem:[#allocation2 + $0x100] sm:$0xff]  ;;  %v1243_v60 = vld [vmem:[#allocation2 + $0x108] sm:$0xff] }
 0xa4e   :  { %2915 = vmatmul.mubr.msk.bf16.vlgmr.msra.gmra.mrb[24].mxu1 %vm380_vm11, %v1038_v48  ;;  %v1249_v48 = vpack.c.bf16 %v1243_v60, %v1242_v41  ;;  %v2673_v60 = vld [vmem:[#allocation2 + $0x140] ss:$0 sm:$0xff] }
 0xa4f   :  { %2928 = vmatprep.mubr.msk.bf16.mxu1 %vm3293_vm1, %v3292_v0 }
 0xb21   :  { %v1079_v54 = vpop.f32.mrb[24].mxu1 }
 0xb22   :  { %v2916_v55 = vpop.f32.mrb[25].mxu1 }
 0xb23   :  { %v1082_v56 = vpop.f32.mrb[26].mxu1 }
 0xb24   :  { %v1086_v57 = vpack.c.bf16 %v1082_v56, %v1079_v54  ;;  %v2917_v58 = vpop.f32.mrb[27].mxu1  ;;  %v2668_v54 = vld [vmem:[#allocation2 + $0xd8] ss:$0 sm:$0xff] }
 0xb26   :  { %2921 = vmatmul.mubr.msk.bf16.vlgmr.msra.gmra.mrb[28].mxu0 %vm292_vm5, %v1086_v57 }
 0xb27   :  { %2940 = vmatprep.mubr.msk.bf16.mxu0 %vm3293_vm1, %v3292_v0  ;;  %2933 = vmatpush3.bf16.msra.mxu0 %v1247_v26  ;;  %v1348_v26 = vpack.c.bf16 %v1344_v24, %v1343_v23 }
 0xb28   :  { %2934 = vmatprep.subr.bf16.mxu0 %v3292_v0 }
 0xb2b   :  { %2935 = vmatpush3.bf16.msra.mxu0 %v1248_v28  ;;  %v1455_v28 = vpack.c.bf16 %v1452_v27, %v1451_v25 }
 0xb2c   :  { %2936 = vmatprep.subr.bf16.mxu0 %v3292_v0 }
 0xb2f   :  { %2937 = vmatpush3.bf16.msra.mxu0 %v1249_v48 }
 0xb30   :  { %2938 = vmatprep.subr.bf16.mxu0 %v3292_v0 }
 0xb33   :  { %2939 = vmatpush3.bf16.msra.mxu0 %v1250_v53 }
 0xb34   :  { %2960 = vmatprep.subr.bf16.mxu0 %v3292_v0 }
 0xbf9   :  { %v1128_v59 = vpop.f32.mrb[28].mxu0 }
 0xbfa   :  { %v1135_v62 = vadd.f32 %v1128_v59, %v923_v38  ;;  %v2922_v63 = vpop.f32.mrb[29].mxu0  ;;  %v2666_v38 = vld [vmem:[#allocation2 + $0x128] ss:$0 sm:$0xff] }
 0xbfb   :  { %v1131_v52 = vpop.f32.mrb[30].mxu0 }
 0xbfc   :  { %v1136_v1 = vadd.f32 %v1131_v52, %v924_v42  ;;  %v2923_v5 = vpop.f32.mrb[31].mxu0  ;;  %v1137_v3 = vadd.f32 %v1135_v62, %v3346_v29 }
 0xbfd   :  { %v2670_v5 = vld [vmem:[#allocation2 + $0x120] ss:$0 sm:$0xff] }
 0xbfe   :  { %v1141_v6 = vsel %vm133_vm4, %v1137_v3, 0.0  ;;  %v1138_v7 = vadd.f32 %v1136_v1, %v3348_v30  ;;  %v1181_v30 = vld [vmem:[#allocation2 + $0xc0] sm:$0xff] }
 0xbff   :  { %1142 = vadd.xlane.f32.xlu0 %v1141_v6  ;;  %v1185_v19 = vpack.c.bf16 %v1181_v30, %v1180_v18 }
 0xc00   :  { %v1144_v8 = vsel %vm133_vm4, %v1138_v7, 0.0 }
 0xc01   :  { %2925 = vmatpush3.bf16.msra.mxu1 %v1185_v19 }
 0xc02   :  { %2926 = vmatprep.subr.bf16.mxu1 %v3292_v0 }
 0xc03   :  { %1145 = vadd.xlane.f32.xlu0 %v1144_v8 }
 0xc05   :  { %2927 = vmatpush3.bf16.msra.mxu1 %v1186_v22 }
 0xc06   :  { %2944 = vmatprep.subr.bf16.mxu1 %v3292_v0 }
 0xc8c   :  { %v1143_v9 = vpop.xlane.xlu0 %1142 }
 0xc8d   :  { %v1148_v10 = vmul.f32 0.03125, %v1143_v9 }
 0xc8f   :  { %v1150_v11 = vsub.f32 %v1137_v3, %v1148_v10 }
 0xc90   :  { %v1146_v12 = vpop.xlane.xlu0 %1145 }
 0xc91   :  { %v1149_v13 = vmul.f32 0.03125, %v1146_v12  ;;  %v1152_v14 = vmul.f32 %v1150_v11, %v1150_v11 }
 0xc93   :  { %v1151_v15 = vsub.f32 %v1138_v7, %v1149_v13  ;;  %v1154_v16 = vsel %vm133_vm4, %v1152_v14, 0.0 }
 0xc94   :  { %1155 = vadd.xlane.f32.xlu0 %v1154_v16 }
 0xc95   :  { %v1153_v17 = vmul.f32 %v1151_v15, %v1151_v15 }
 0xc97   :  { %v1157_v29 = vsel %vm133_vm4, %v1153_v17, 0.0 }
 0xc98   :  { %1158 = vadd.xlane.f32.xlu0 %v1157_v29 }
 0xd21   :  { %v1156_v31 = vpop.xlane.xlu0 %1155 }
 0xd22   :  { %v1160_v32 = vmul.f32 0.03125, %v1156_v31  ;;  %v1345_v31 = vld [vmem:[#allocation2 + $0x158] sm:$0xff] }
 0xd24   :  { %v1162_v33 = vadd.f32 1e-05, %v1160_v32  ;;  %v1346_v32 = vld [vmem:[#allocation2 + $0x160] sm:$0xff] }
 0xd25   :  { %v1159_v34 = vpop.xlane.xlu0 %1158 }
 0xd26   :  { %3193 = vrsqrt.f32 %v1162_v33  ;;  %v1161_v35 = vmul.f32 0.03125, %v1159_v34  ;;  %v1453_v33 = vld [vmem:[#allocation2 + $0x1a8] sm:$0xff]  ;;  %v1349_v34 = vpack.c.bf16 %v1346_v32, %v1345_v31 }
 0xd28   :  { %v1163_v36 = vadd.f32 1e-05, %v1161_v35  ;;  %v1454_v35 = vld [vmem:[#allocation2 + $0x1b0] sm:$0xff] }
 0xd2a   :  { %3195 = vrsqrt.f32 %v1163_v36  ;;  %v1456_v36 = vpack.c.bf16 %v1454_v35, %v1453_v33 }
 0xd30   :  { %v3194_v37 = vpop.eup %3193 }
 0xd31   :  { %v1166_v61 = vmul.f32 %v3194_v37, %v1150_v11 }
 0xd33   :  { %v1172_v40 = vmul.f32 %v2666_v38, %v1166_v61 }
 0xd34   :  { %v3196_v39 = vpop.eup %3195 }
 0xd35   :  { %v1167_v42 = vmul.f32 %v3196_v39, %v1151_v15  ;;  %v1178_v45 = vadd.f32 %v2667_v43, %v1172_v40 }
 0xd37   :  { %v1173_v44 = vmul.f32 %v2666_v38, %v1167_v42 }
 0xd39   :  { %v1179_v46 = vadd.f32 %v2667_v43, %v1173_v44 }
 0xd3b   :  { %v1184_v47 = vpack.c.bf16 %v1179_v46, %v1178_v45 }
 0xd3d   :  { %2929 = vmatmul.mubr.msk.bf16.vlgmr.msra.gmra.mrb[28].mxu1 %vm133_vm4, %v1184_v47 }
 0xd3e   :  { %2948 = vmatprep.mubr.msk.bf16.mxu1 %vm3293_vm1, %v3292_v0  ;;  %2945 = vmatpush3.bf16.msra.mxu1 %v1348_v26 }
 0xd3f   :  { %2946 = vmatprep.subr.bf16.mxu1 %v3292_v0 }
 0xd42   :  { %2947 = vmatpush3.bf16.msra.mxu1 %v1349_v34 }
 0xd43   :  { %2952 = vmatprep.subr.bf16.mxu1 %v3292_v0 }
 0xe10   :  { %v1229_v55 = vpop.f32.mrb[28].mxu1 }
 0xe11   :  { %v1230_v56 = vadd.f32 %v2668_v54, %v1229_v55  ;;  %v2930_v57 = vpop.f32.mrb[29].mxu1  ;;  %v1403_v55 = vpack.c.bf16 %v1400_v51, %v1399_v49 }
 0xe12   :  { %v1232_v58 = vpop.f32.mrb[30].mxu1  ;;  %v1401_v57 = vld [vmem:[#allocation2 + $0x180] sm:$0xff] }
 0xe13   :  { %v1233_v59 = vadd.f32 %v2668_v54, %v1232_v58  ;;  %v2931_v62 = vpop.f32.mrb[31].mxu1  ;;  %v1236_v63 = vmax.f32 %v1230_v56, 0.0  ;;  %v1402_v58 = vld [vmem:[#allocation2 + $0x188] sm:$0xff] }
 0xe14   :  { %v2674_v62 = vld [vmem:[#allocation2 + $0x168] ss:$0 sm:$0xff] }
 0xe15   :  { %v1237_v52 = vmax.f32 %v1233_v59, 0.0  ;;  %v1404_v59 = vpack.c.bf16 %v1402_v58, %v1401_v57 }
 0xe17   :  { %v1246_v1 = vpack.c.bf16 %v1237_v52, %v1236_v63  ;;  %v2678_v52 = vld [vmem:[#allocation2 + $0x1b8] ss:$0 sm:$0xff] }
 0xe19   :  { %2941 = vmatmul.mubr.msk.bf16.vlgmr.msra.gmra.mrb[32].mxu0 %vm1256_vm12, %v1246_v1 }
 0xe1a   :  { %2964 = vmatprep.mubr.msk.bf16.mxu0 %vm3293_vm1, %v3292_v0  ;;  %2961 = vmatpush3.bf16.msra.mxu0 %v1455_v28 }
 0xe1b   :  { %2962 = vmatprep.subr.bf16.mxu0 %v3292_v0 }
 0xe1e   :  { %2963 = vmatpush3.bf16.msra.mxu0 %v1456_v36 }
 0xe1f   :  { %2975 = vmatprep.subr.bf16.mxu0 %v3292_v0 }
 0xeec   :  { %v1294_v3 = vpop.f32.mrb[32].mxu0 }
 0xeed   :  { %v1295_v6 = vadd.f32 %v2670_v5, %v1294_v3  ;;  %v2942_v7 = vpop.f32.mrb[33].mxu0 }
 0xeee   :  { %v1297_v8 = vpop.f32.mrb[34].mxu0 }
 0xeef   :  { %v1298_v9 = vadd.f32 %v2670_v5, %v1297_v8  ;;  %v2943_v10 = vpop.f32.mrb[35].mxu0  ;;  %v1301_v11 = vadd.f32 %v1295_v6, %v1178_v45  ;;  %v2672_v45 = vld [vmem:[#allocation2 + $0x138] ss:$0 sm:$0xff] }
 0xef1   :  { %v1305_v12 = vsel %vm133_vm4, %v1301_v11, 0.0  ;;  %v1302_v13 = vadd.f32 %v1298_v9, %v1179_v46 }
 0xef2   :  { %1306 = vadd.xlane.f32.xlu1 %v1305_v12 }
 0xef3   :  { %v1308_v14 = vsel %vm133_vm4, %v1302_v13, 0.0 }
 0xef4   :  { %1309 = vadd.xlane.f32.xlu0 %v1308_v14  ;;  %v2676_v14 = vld [vmem:[#allocation2 + $0x190] ss:$0 sm:$0xff] }
 0xf7f   :  { %v1307_v15 = vpop.xlane.xlu1 %1306 }
 0xf80   :  { %v1311_v16 = vmul.f32 0.03125, %v1307_v15 }
 0xf81   :  { %v1310_v17 = vpop.xlane.xlu0 %1309 }
 0xf82   :  { %v1313_v29 = vsub.f32 %v1301_v11, %v1311_v16  ;;  %v1312_v18 = vmul.f32 0.03125, %v1310_v17 }
 0xf84   :  { %v1314_v30 = vsub.f32 %v1302_v13, %v1312_v18  ;;  %v1315_v19 = vmul.f32 %v1313_v29, %v1313_v29 }
 0xf86   :  { %v1317_v20 = vsel %vm133_vm4, %v1315_v19, 0.0  ;;  %v1316_v21 = vmul.f32 %v1314_v30, %v1314_v30 }
 0xf87   :  { %1318 = vadd.xlane.f32.xlu0 %v1317_v20 }
 0xf88   :  { %v1320_v22 = vsel %vm133_vm4, %v1316_v21, 0.0 }
 0xf8b   :  { %1321 = vadd.xlane.f32.xlu0 %v1320_v22 }
0x1014   :  { %v1319_v37 = vpop.xlane.xlu0 %1318 }
0x1015   :  { %v1323_v61 = vmul.f32 0.03125, %v1319_v37 }
0x1017   :  { %v1325_v38 = vadd.f32 1e-05, %v1323_v61 }
0x1018   :  { %v1322_v39 = vpop.xlane.xlu0 %1321 }
0x1019   :  { %3197 = vrsqrt.f32 %v1325_v38  ;;  %v1324_v40 = vmul.f32 0.03125, %v1322_v39 }
0x101b   :  { %v1326_v42 = vadd.f32 1e-05, %v1324_v40 }
0x101d   :  { %3199 = vrsqrt.f32 %v1326_v42 }
0x1023   :  { %v3198_v43 = vpop.eup %3197 }
0x1024   :  { %v1329_v44 = vmul.f32 %v3198_v43, %v1313_v29 }
0x1026   :  { %v1335_v47 = vmul.f32 %v2672_v45, %v1329_v44 }
0x1027   :  { %v3200_v46 = vpop.eup %3199 }
0x1028   :  { %v1330_v41 = vmul.f32 %v3200_v46, %v1314_v30  ;;  %v3531_v53 = vadd.f32 %v2673_v60, %v1335_v47 }
0x102a   :  { %v1336_v48 = vmul.f32 %v2672_v45, %v1330_v41 }
0x102c   :  { %v3533_v54 = vadd.f32 %v2673_v60, %v1336_v48 }
0x102e   :  { %v1347_v56 = vpack.c.bf16 %v3533_v54, %v3531_v53 }
0x1030   :  { %2949 = vmatmul.mubr.msk.bf16.vlgmr.msra.gmra.mrb[32].mxu1 %vm133_vm4, %v1347_v56  ;;  %2965 = vmatmul.mubr.msk.bf16.vlgmr.msra.gmra.mrb[36].mxu0 %vm133_vm4, %v1347_v56 }
0x1031   :  { %2953 = vmatpush3.bf16.msra.mxu1 %v1403_v55  ;;  %2956 = vmatprep.mubr.msk.bf16.mxu1 %vm3293_vm1, %v3292_v0  ;;  %v1503_v55 = vld [vmem:[#allocation2 + $0x1c0] sm:$0xff] }
0x1032   :  { %2954 = vmatprep.subr.bf16.mxu1 %v3292_v0  ;;  %2977 = vmatprep.mubr.msk.bf16.mxu0 %vm3293_vm1, %v3292_v0 }
0x1035   :  { %2955 = vmatpush3.bf16.msra.mxu1 %v1404_v59 }
0x1038   :  { %2957 = vmatmul.mubr.msk.bf16.vlgmr.msra.gmra.mrb[36].mxu1 %vm133_vm4, %v1347_v56  ;;  %v1669_v56 = vpack.c.bf16 %v1503_v55, %v1503_v55 }
0x103a   :  { %v1674_v57 = vsel %vm73_vm0, %v1669_v56, 0 }
0x1103   :  { %v1392_v63 = vpop.f32.mrb[32].mxu1  ;;  %v1496_v1 = vpop.f32.mrb[36].mxu0 }
0x1104   :  { %v3545_v5 = vadd.f32 %v2674_v62, %v1392_v63  ;;  %v2950_v3 = vpop.f32.mrb[33].mxu1  ;;  %v2966_v6 = vpop.f32.mrb[37].mxu0  ;;  %v1497_v9 = vadd.f32 %v2678_v52, %v1496_v1 }
0x1105   :  { %v1395_v7 = vpop.f32.mrb[34].mxu1  ;;  %v1499_v8 = vpop.f32.mrb[38].mxu0 }
0x1106   :  { %v1500_v10 = vadd.f32 %v2678_v52, %v1499_v8  ;;  %v2967_v11 = vpop.f32.mrb[39].mxu0  ;;  %1719 = vrot.lane.b32.xlu1 %v3545_v5, %s3296_s0  ;;  %v2951_v12 = vpop.f32.mrb[35].mxu1  ;;  %2972 = vmatprep.mubr.msk.f32.mxu1 %vm292_vm5, %v3545_v5  ;;  %v3561_v21 = vadd.f32 %v2674_v62, %v1395_v7 }
0x1108   :  { %v3551_v13 = vpack.c.bf16 %v1500_v10, %v1497_v9 }
0x110a   :  { %2976 = vmatpush3.bf16.msra.mxu0 %v3551_v13 }
0x110b   :  { %v1444_v15 = vpop.f32.mrb[36].mxu1 }
0x110c   :  { %v2958_v16 = vpop.f32.mrb[37].mxu1  ;;  %v1445_v29 = vadd.f32 %v2676_v14, %v1444_v15 }
0x110d   :  { %v1447_v17 = vpop.f32.mrb[38].mxu1 }
0x110e   :  { %v1448_v18 = vadd.f32 %v2676_v14, %v1447_v17  ;;  %v2959_v30 = vpop.f32.mrb[39].mxu1 }
0x1110   :  { %v3096_v19 = vpack.c.bf16 %v1448_v18, %v1445_v29  ;;  %v3554_v20 = vpack.i.bf16 %v1448_v18, %v1445_v29 }
0x1112   :  { %3098 = vmatprep.subr.msk.bf16.mxu1 %vm3367_vm6, %v3096_v19 }
0x1113   :  { %3101 = vmatpush3.bf16.xpose.msk.msra.mxu1 %vm3367_vm6, %v3096_v19 }
0x1114   :  { %2981 = vmatprep.subr.bf16.mxu1 %v3292_v0 }
0x111a   :  { %2973 = vmatmul.mubr.msk.f32.vlgmr.msra.gmra.mrb[18].mxu1 %vm292_vm5, %v3561_v21 }
0x111b   :  { %2983 = vmatprep.mubr.msk.bf16.mxu1 %vm3293_vm1, %v3292_v0  ;;  %2982 = vmatpush3.bf16.msra.mxu1 %v1674_v57 }
0x111c   :  { %2994 = vmatprep.subr.bf16.mxu1 %v3292_v0 }
0x1178   :  { %v1720_v49 = vpop.permute.xlu1 %1719 }
0x11ed   :  { %v2974_v22 = vpop.f32.mrb[18].mxu1 }
0x11ee   :  { %v1591_v23 = vpop.f32.mrb[19].mxu1  ;;  %v1597_v25 = vadd.f32 %v2974_v22, %v3389_v4 }
0x11ef   :  { %v1592_v24 = vadd.f32 %v1591_v23, %v3387_v2 }
0x11f0   :  { %v1603_v27 = vsel %vm380_vm11, %v1597_v25, -inf }
0x11f1   :  { %v1600_v26 = vsel %vm380_vm11, %v1592_v24, -inf }
0x11f2   :  { %1601 = vmax.xlane.f32.xlu0 %v1600_v26 }
0x11f6   :  { %1604 = vmax.xlane.f32.xlu0 %v1603_v27 }
0x127f   :  { %v1602_v28 = vpop.xlane.xlu0 %1601 }
0x1280   :  { %v1606_v31 = vsub.f32 %v1592_v24, %v1602_v28 }
0x1282   :  { %v1608_v34 = vmul.f32 1.442695, %v1606_v31 }
0x1283   :  { %v1605_v32 = vpop.xlane.xlu0 %1604 }
0x1284   :  { %v1607_v33 = vsub.f32 %v1597_v25, %v1605_v32 }
0x1286   :  { %v1610_v35 = vmul.f32 1.442695, %v1607_v33 }
0x1288   :  { %3201 = vpow2.f32 %v1610_v35 }
0x1289   :  { %3203 = vpow2.f32 %v1608_v34 }
0x1292   :  { %v3202_v36 = vpop.eup %3201 }
0x1293   :  { %v1615_v37 = vsel %vm380_vm11, %v3202_v36, 0.0  ;;  %v3204_v61 = vpop.eup %3203 }
0x1294   :  { %1616 = vadd.xlane.f32.xlu0 %v1615_v37  ;;  %v1612_v38 = vsel %vm380_vm11, %v3204_v61, 0.0 }
0x1298   :  { %1613 = vadd.xlane.f32.xlu0 %v1612_v38 }
0x12ae   :  { %3147 = vrot.lane.b32.xlu0 %v3554_v20, %s3296_s0 }
0x12b2   :  { %1721 = vrot.lane.b32.xlu0 %v3561_v21, %s3296_s0 }
0x1321   :  { %v1617_v39 = vpop.xlane.xlu0 %1616 }
0x1322   :  { %3205 = vrcp.f32 %v1617_v39 }
0x1325   :  { %v1614_v40 = vpop.xlane.xlu0 %1613 }
0x1326   :  { %3207 = vrcp.f32 %v1614_v40  ;;  %v1504_v40 = vld [vmem:[#allocation2 + $0x1c8] sm:$0xff] }
0x1329   :  { %v3148_v42 = vpop.permute.xlu0 %3147 }
0x132a   :  { %v3150_v43 = vunpack.i.h.bf16 %v3148_v42  ;;  %v3149_v44 = vunpack.i.l.bf16 %v3148_v42  ;;  %v1882_v42 = vpack.c.bf16 %v1504_v40, %v1504_v40 }
0x132c   :  { %v3102_v45 = vpack.c.bf16 %v3150_v43, %v3149_v44  ;;  %v3206_v46 = vpop.eup %3205  ;;  %v1887_v43 = vsel %vm73_vm0, %v1882_v42, 0 }
0x132d   :  { %v1621_v41 = vmul.f32 %v3206_v46, %v3202_v36  ;;  %v1722_v51 = vpop.permute.xlu0 %1721 }
0x132e   :  { %3104 = vmatprep.subr.msk.bf16.mxu0 %vm3367_vm6, %v3102_v45 }
0x1330   :  { %v3208_v47 = vpop.eup %3207 }
0x1331   :  { %v1620_v60 = vmul.f32 %v3208_v47, %v3204_v61 }
0x1333   :  { %v1622_v48 = vpack.c.bf16 %v1621_v41, %v1620_v60 }
0x1335   :  { %2978 = vmatmul.mubr.msk.bf16.vlgmr.msra.gmra.mrb[40].mxu0 %vm380_vm11, %v1622_v48 }
0x1336   :  { %3107 = vmatpush3.bf16.xpose.msk.msra.mxu0 %vm3367_vm6, %v3102_v45  ;;  %2991 = vmatprep.mubr.msk.f32.mxu0 %vm292_vm5, %v1720_v49 }
0x1337   :  { %3000 = vmatprep.subr.bf16.mxu0 %v3292_v0 }
0x133d   :  { %2992 = vmatmul.mubr.msk.f32.vlgmr.msra.gmra.mrb[26].mxu0 %vm292_vm5, %v1722_v51 }
0x133e   :  { %3002 = vmatprep.mubr.msk.bf16.mxu0 %vm3293_vm1, %v3292_v0  ;;  %3001 = vmatpush3.bf16.msra.mxu0 %v1887_v43 }
0x133f   :  { %3013 = vmatprep.subr.bf16.mxu0 %v3292_v0 }
0x1408   :  { %v1661_v58 = vpop.f32.mrb[40].mxu0 }
0x1409   :  { %v2979_v59 = vpop.f32.mrb[41].mxu0 }
0x140a   :  { %v1664_v62 = vpop.f32.mrb[42].mxu0 }
0x140b   :  { %v1668_v63 = vpack.c.bf16 %v1664_v62, %v1661_v58  ;;  %v2980_v52 = vpop.f32.mrb[43].mxu0 }
0x140d   :  { %2984 = vmatmul.mubr.msk.bf16.vlgmr.msra.gmra.mrb[40].mxu1 %vm292_vm5, %v1668_v63 }
0x140e   :  { %2996 = vmatprep.mubr.msk.bf16.mxu1 %vm3293_vm1, %v3292_v0 }
0x1410   :  { %v2993_v1 = vpop.f32.mrb[26].mxu0 }
0x1411   :  { %v1807_v3 = vadd.f32 %v2993_v1, %v3389_v4  ;;  %v1801_v6 = vpop.f32.mrb[27].mxu0 }
0x1412   :  { %v1802_v7 = vadd.f32 %v1801_v6, %v3387_v2 }
0x1413   :  { %v1813_v8 = vsel %vm380_vm11, %v1807_v3, -inf }
0x1414   :  { %1814 = vmax.xlane.f32.xlu0 %v1813_v8  ;;  %v1810_v9 = vsel %vm380_vm11, %v1802_v7, -inf  ;;  %v2680_v8 = vld [vmem:[#allocation2 + $0x1e0] ss:$0 sm:$0xff] }
0x1415   :  { %1811 = vmax.xlane.f32.xlu1 %v1810_v9 }
0x14a1   :  { %v1815_v10 = vpop.xlane.xlu0 %1814 }
0x14a2   :  { %v1817_v11 = vsub.f32 %v1807_v3, %v1815_v10  ;;  %v1812_v12 = vpop.xlane.xlu1 %1811 }
0x14a3   :  { %v1816_v14 = vsub.f32 %v1802_v7, %v1812_v12 }
0x14a4   :  { %v1820_v15 = vmul.f32 1.442695, %v1817_v11 }
0x14a5   :  { %v1818_v16 = vmul.f32 1.442695, %v1816_v14 }
0x14a6   :  { %3209 = vpow2.f32 %v1820_v15 }
0x14a7   :  { %3211 = vpow2.f32 %v1818_v16 }
0x14b0   :  { %v3210_v17 = vpop.eup %3209 }
0x14b1   :  { %v3212_v29 = vpop.eup %3211  ;;  %v1825_v18 = vsel %vm380_vm11, %v3210_v17, 0.0 }
0x14b2   :  { %1826 = vadd.xlane.f32.xlu1 %v1825_v18  ;;  %v1822_v30 = vsel %vm380_vm11, %v3212_v29, 0.0 }
0x14b3   :  { %1823 = vadd.xlane.f32.xlu0 %v1822_v30 }
0x14c3   :  { %3152 = vrot.lane.b32.xlu1 %v3554_v20, %s3297_s26 }
0x14c7   :  { %1932 = vrot.lane.b32.xlu1 %v3545_v5, %s3297_s26 }
0x14c9   :  { %1834 = vrot.lane.b32.xlu0 %v3551_v13, %s3296_s0 }
0x14cd   :  { %1934 = vrot.lane.b32.xlu0 %v3561_v21, %s3297_s26 }
0x14e0   :  { %v3606_v19 = vpop.f32.mrb[40].mxu1 }
0x14e1   :  { %v2985_v22 = vpop.f32.mrb[41].mxu1  ;;  %v1717_v9 = vadd.f32 %v2680_v8, %v3606_v19 }
0x14e2   :  { %v3608_v23 = vpop.f32.mrb[42].mxu1 }
0x14e3   :  { %v2986_v24 = vpop.f32.mrb[43].mxu1  ;;  %v1718_v11 = vadd.f32 %v2680_v8, %v3608_v23  ;;  %v1506_v8 = vld [vmem:[#allocation2 + $0x1d8] sm:$0xff] }
0x153f   :  { %v1827_v25 = vpop.xlane.xlu1 %1826 }
0x1540   :  { %3213 = vrcp.f32 %v1827_v25  ;;  %v1824_v26 = vpop.xlane.xlu0 %1823 }
0x1541   :  { %3215 = vrcp.f32 %v1824_v26 }
0x1543   :  { %v3153_v27 = vpop.permute.xlu1 %3152 }
0x1544   :  { %v3155_v28 = vunpack.i.h.bf16 %v3153_v27  ;;  %v3154_v31 = vunpack.i.l.bf16 %v3153_v27  ;;  %v1835_v32 = vpop.permute.xlu0 %1834 }
0x1545   :  { %2995 = vmatpush3.bf16.msra.mxu1 %v1835_v32 }
0x1546   :  { %v3108_v33 = vpack.c.bf16 %v3155_v28, %v3154_v31  ;;  %v1505_v31 = vld [vmem:[#allocation2 + $0x1d0] sm:$0xff] }
0x1547   :  { %v1933_v38 = vpop.permute.xlu1 %1932  ;;  %v2094_v32 = vpack.c.bf16 %v1505_v31, %v1505_v31 }
0x1548   :  { %3110 = vmatprep.subr.msk.bf16.mxu1 %vm3367_vm6, %v3108_v33  ;;  %v1935_v39 = vpop.permute.xlu0 %1934 }
0x154a   :  { %v3214_v34 = vpop.eup %3213 }
0x154b   :  { %v3216_v35 = vpop.eup %3215  ;;  %v1831_v36 = vmul.f32 %v3214_v34, %v3210_v17 }
0x154c   :  { %v1830_v37 = vmul.f32 %v3216_v35, %v3212_v29 }
0x154e   :  { %v1832_v61 = vpack.c.bf16 %v1831_v36, %v1830_v37 }
0x1550   :  { %2997 = vmatmul.mubr.msk.bf16.vlgmr.msra.gmra.mrb[44].mxu1 %vm380_vm11, %v1832_v61 }
0x1551   :  { %3113 = vmatpush3.bf16.xpose.msk.msra.mxu1 %vm3367_vm6, %v3108_v33  ;;  %3010 = vmatprep.mubr.msk.f32.mxu1 %vm292_vm5, %v1933_v38  ;;  %v2099_v33 = vsel %vm73_vm0, %v2094_v32, 0 }
0x1552   :  { %3019 = vmatprep.subr.bf16.mxu1 %v3292_v0 }
0x1558   :  { %3011 = vmatmul.mubr.msk.f32.vlgmr.msra.gmra.mrb[48].mxu1 %vm292_vm5, %v1935_v39 }
0x1559   :  { %3021 = vmatprep.mubr.msk.bf16.mxu1 %vm3293_vm1, %v3292_v0  ;;  %3020 = vmatpush3.bf16.msra.mxu1 %v2099_v33 }
0x155a   :  { %3032 = vmatprep.subr.bf16.mxu1 %v3292_v0 }
0x1623   :  { %v1874_v44 = vpop.f32.mrb[44].mxu1 }
0x1624   :  { %v2998_v45 = vpop.f32.mrb[45].mxu1 }
0x1625   :  { %v1877_v46 = vpop.f32.mrb[46].mxu1 }
0x1626   :  { %v1881_v47 = vpack.c.bf16 %v1877_v46, %v1874_v44  ;;  %v2999_v41 = vpop.f32.mrb[47].mxu1 }
0x1628   :  { %3003 = vmatmul.mubr.msk.bf16.vlgmr.msra.gmra.mrb[44].mxu0 %vm292_vm5, %v1881_v47 }
0x1629   :  { %3015 = vmatprep.mubr.msk.bf16.mxu0 %vm3293_vm1, %v3292_v0 }
0x162b   :  { %v3012_v60 = vpop.f32.mrb[48].mxu1 }
0x162c   :  { %v2020_v48 = vadd.f32 %v3012_v60, %v3389_v4  ;;  %v2014_v49 = vpop.f32.mrb[49].mxu1 }
0x162d   :  { %v2015_v51 = vadd.f32 %v2014_v49, %v3387_v2 }
0x162e   :  { %v2026_v55 = vsel %vm380_vm11, %v2020_v48, -inf }
0x162f   :  { %2027 = vmax.xlane.f32.xlu0 %v2026_v55  ;;  %v2023_v56 = vsel %vm380_vm11, %v2015_v51, -inf }
0x1630   :  { %2024 = vmax.xlane.f32.xlu1 %v2023_v56 }
0x16bc   :  { %v2028_v57 = vpop.xlane.xlu0 %2027 }
0x16bd   :  { %v2030_v58 = vsub.f32 %v2020_v48, %v2028_v57  ;;  %v2025_v59 = vpop.xlane.xlu1 %2024 }
0x16be   :  { %v2029_v62 = vsub.f32 %v2015_v51, %v2025_v59 }
0x16bf   :  { %v2033_v63 = vmul.f32 1.442695, %v2030_v58 }
0x16c0   :  { %v2031_v52 = vmul.f32 1.442695, %v2029_v62 }
0x16c1   :  { %3217 = vpow2.f32 %v2033_v63 }
0x16c2   :  { %3219 = vpow2.f32 %v2031_v52 }
0x16cb   :  { %v3218_v1 = vpop.eup %3217 }
0x16cc   :  { %v3220_v3 = vpop.eup %3219  ;;  %v2038_v6 = vsel %vm380_vm11, %v3218_v1, 0.0 }
0x16cd   :  { %2039 = vadd.xlane.f32.xlu1 %v2038_v6  ;;  %v2035_v7 = vsel %vm380_vm11, %v3220_v3, 0.0 }
0x16ce   :  { %2036 = vadd.xlane.f32.xlu0 %v2035_v7 }
0x16de   :  { %3157 = vrot.lane.b32.xlu1 %v3554_v20, %s3298_s27 }
0x16e2   :  { %2144 = vrot.lane.b32.xlu1 %v3545_v5, %s3298_s27 }
0x16e4   :  { %2046 = vrot.lane.b32.xlu0 %v3551_v13, %s3297_s26 }
0x16e8   :  { %2146 = vrot.lane.b32.xlu0 %v3561_v21, %s3298_s27 }
0x16fb   :  { %v1923_v10 = vpop.f32.mrb[44].mxu0 }
0x16fc   :  { %v3641_v12 = vadd.f32 %v1923_v10, %v1717_v9  ;;  %v3004_v14 = vpop.f32.mrb[45].mxu0  ;;  %v2306_v9 = vpack.c.bf16 %v1506_v8, %v1506_v8  ;;  %v2707_v8 = vld [vmem:[#allocation2 + $0x208] ss:$0 sm:$0xff] }
0x16fd   :  { %v1926_v15 = vpop.f32.mrb[46].mxu0 }
0x16fe   :  { %v3643_v20 = vadd.f32 %v1926_v15, %v1718_v11  ;;  %v3005_v16 = vpop.f32.mrb[47].mxu0  ;;  %v2311_v10 = vsel %vm73_vm0, %v2306_v9, 0 }
0x175a   :  { %v2040_v5 = vpop.xlane.xlu1 %2039 }
0x175b   :  { %3221 = vrcp.f32 %v2040_v5  ;;  %v2037_v17 = vpop.xlane.xlu0 %2036 }
0x175c   :  { %3223 = vrcp.f32 %v2037_v17 }
0x175e   :  { %v3158_v29 = vpop.permute.xlu1 %3157 }
0x175f   :  { %v3160_v18 = vunpack.i.h.bf16 %v3158_v29  ;;  %v3159_v21 = vunpack.i.l.bf16 %v3158_v29  ;;  %v2047_v30 = vpop.permute.xlu0 %2046 }
0x1760   :  { %3014 = vmatpush3.bf16.msra.mxu0 %v2047_v30 }
0x1761   :  { %v3114_v19 = vpack.c.bf16 %v3160_v18, %v3159_v21 }
0x1762   :  { %v2145_v27 = vpop.permute.xlu1 %2144 }
0x1763   :  { %3116 = vmatprep.subr.msk.bf16.mxu0 %vm3367_vm6, %v3114_v19  ;;  %v2147_v28 = vpop.permute.xlu0 %2146 }
0x1765   :  { %v3222_v22 = vpop.eup %3221 }
0x1766   :  { %v3224_v23 = vpop.eup %3223  ;;  %v2044_v24 = vmul.f32 %v3222_v22, %v3218_v1 }
0x1767   :  { %v2043_v25 = vmul.f32 %v3224_v23, %v3220_v3 }
0x1769   :  { %v2045_v26 = vpack.c.bf16 %v2044_v24, %v2043_v25 }
0x176b   :  { %3016 = vmatmul.mubr.msk.bf16.vlgmr.msra.gmra.mrb[48].mxu0 %vm380_vm11, %v2045_v26 }
0x176c   :  { %3119 = vmatpush3.bf16.xpose.msk.msra.mxu0 %vm3367_vm6, %v3114_v19  ;;  %3029 = vmatprep.mubr.msk.f32.mxu0 %vm292_vm5, %v2145_v27 }
0x176d   :  { %3038 = vmatprep.subr.bf16.mxu0 %v3292_v0 }
0x1773   :  { %3030 = vmatmul.mubr.msk.f32.vlgmr.msra.gmra.mrb[52].mxu0 %vm292_vm5, %v2147_v28 }
0x1774   :  { %3040 = vmatprep.mubr.msk.bf16.mxu0 %vm3293_vm1, %v3292_v0  ;;  %3039 = vmatpush3.bf16.msra.mxu0 %v2311_v10 }
0x1775   :  { %3052 = vmatprep.subr.bf16.mxu0 %v3292_v0 }
0x183e   :  { %v2086_v34 = vpop.f32.mrb[48].mxu0 }
0x183f   :  { %v3017_v50 = vpop.f32.mrb[49].mxu0 }
0x1840   :  { %v2089_v35 = vpop.f32.mrb[50].mxu0  ;;  %v2398_v50 = vld [vmem:[#allocation2 + $0x1e8] sm:$0xff] }
0x1841   :  { %v2093_v36 = vpack.c.bf16 %v2089_v35, %v2086_v34  ;;  %v3018_v37 = vpop.f32.mrb[51].mxu0 }
0x1842   :  { %v2401_v37 = vld [vmem:[#allocation2 + $0x200] sm:$0xff] }
0x1843   :  { %3022 = vmatmul.mubr.msk.bf16.vlgmr.msra.gmra.mrb[52].mxu1 %vm292_vm5, %v2093_v36  ;;  %v2400_v36 = vld [vmem:[#allocation2 + $0x1f8] sm:$0xff] }
0x1844   :  { %3034 = vmatprep.mubr.msk.bf16.mxu1 %vm3293_vm1, %v3292_v0 }
0x1846   :  { %v3031_v61 = vpop.f32.mrb[52].mxu0 }
0x1847   :  { %v2232_v38 = vadd.f32 %v3031_v61, %v3389_v4  ;;  %v2226_v39 = vpop.f32.mrb[53].mxu0  ;;  %v2404_v61 = vpack.c.bf16 %v2401_v37, %v2400_v36  ;;  %v2561_v36 = vld [vmem:[#allocation2 + $0x278] sm:$0xff]  ;;  %v2562_v37 = vld [vmem:[#allocation2 + $0x280] sm:$0xff] }
0x1848   :  { %v2227_v40 = vadd.f32 %v2226_v39, %v3387_v2  ;;  %v2457_v39 = vld [vmem:[#allocation2 + $0x218] sm:$0xff] }
0x1849   :  { %v2238_v42 = vsel %vm380_vm11, %v2232_v38, -inf }
0x184a   :  { %2239 = vmax.xlane.f32.xlu0 %v2238_v42  ;;  %v2235_v43 = vsel %vm380_vm11, %v2227_v40, -inf }
0x184b   :  { %2236 = vmax.xlane.f32.xlu1 %v2235_v43  ;;  %v2459_v43 = vld [vmem:[#allocation2 + $0x228] sm:$0xff] }
0x18d7   :  { %v2240_v44 = vpop.xlane.xlu0 %2239 }
0x18d8   :  { %v2242_v45 = vsub.f32 %v2232_v38, %v2240_v44  ;;  %v2237_v46 = vpop.xlane.xlu1 %2236  ;;  %v2456_v38 = vld [vmem:[#allocation2 + $0x210] sm:$0xff] }
0x18d9   :  { %v2241_v47 = vsub.f32 %v2227_v40, %v2237_v46  ;;  %v2458_v40 = vld [vmem:[#allocation2 + $0x220] sm:$0xff]  ;;  %v2465_v42 = vpack.c.bf16 %v2457_v39, %v2456_v38  ;;  %v2563_v38 = vld [vmem:[#allocation2 + $0x288] sm:$0xff]  ;;  %v2564_v39 = vld [vmem:[#allocation2 + $0x290] sm:$0xff] }
0x18da   :  { %v2245_v41 = vmul.f32 1.442695, %v2242_v45  ;;  %v2466_v44 = vpack.c.bf16 %v2459_v43, %v2458_v40  ;;  %v2567_v40 = vpack.c.bf16 %v2564_v39, %v2563_v38 }
0x18db   :  { %v2243_v60 = vmul.f32 1.442695, %v2241_v47 }
0x18dc   :  { %3225 = vpow2.f32 %v2245_v41 }
0x18dd   :  { %3227 = vpow2.f32 %v2243_v60 }
0x18e6   :  { %v3226_v48 = vpop.eup %3225 }
0x18e7   :  { %v3228_v49 = vpop.eup %3227  ;;  %v2250_v4 = vsel %vm380_vm11, %v3226_v48, 0.0 }
0x18e8   :  { %2251 = vadd.xlane.f32.xlu1 %v2250_v4  ;;  %v2247_v2 = vsel %vm380_vm11, %v3228_v49, 0.0 }
0x18e9   :  { %2248 = vadd.xlane.f32.xlu0 %v2247_v2  ;;  %v2705_v2 = vld [vmem:[#allocation2 + $0x258] ss:$0 sm:$0xff] }
0x18ff   :  { %2258 = vrot.lane.b32.xlu0 %v3551_v13, %s3298_s27 }
0x1916   :  { %v2135_v51 = vpop.f32.mrb[52].mxu1 }
0x1917   :  { %v2142_v55 = vadd.f32 %v2135_v51, %v3641_v12  ;;  %v3023_v56 = vpop.f32.mrb[53].mxu1 }
0x1918   :  { %v2138_v57 = vpop.f32.mrb[54].mxu1 }
0x1919   :  { %v2143_v58 = vadd.f32 %v2138_v57, %v3643_v20  ;;  %v3024_v59 = vpop.f32.mrb[55].mxu1  ;;  %v2706_v57 = vld [vmem:[#allocation2 + $0x260] ss:$0 sm:$0xff] }
0x1975   :  { %v2252_v62 = vpop.xlane.xlu1 %2251 }
0x1976   :  { %3229 = vrcp.f32 %v2252_v62  ;;  %v2249_v63 = vpop.xlane.xlu0 %2248 }
0x1977   :  { %3231 = vrcp.f32 %v2249_v63 }
0x197a   :  { %v2259_v52 = vpop.permute.xlu0 %2258 }
0x197b   :  { %3033 = vmatpush3.bf16.msra.mxu1 %v2259_v52  ;;  %v2460_v52 = vld [vmem:[#allocation2 + $0x230] sm:$0xff] }
0x197c   :  { %3044 = vmatprep.subr.bf16.mxu1 %v3292_v0 }
0x1980   :  { %v3230_v1 = vpop.eup %3229 }
0x1981   :  { %v3232_v3 = vpop.eup %3231  ;;  %v2256_v6 = vmul.f32 %v3230_v1, %v3226_v48  ;;  %v2461_v1 = vld [vmem:[#allocation2 + $0x238] sm:$0xff] }
0x1982   :  { %v2255_v13 = vmul.f32 %v3232_v3, %v3228_v49  ;;  %v2467_v3 = vpack.c.bf16 %v2461_v1, %v2460_v52 }
0x1984   :  { %v2257_v7 = vpack.c.bf16 %v2256_v6, %v2255_v13  ;;  %v2462_v6 = vld [vmem:[#allocation2 + $0x240] sm:$0xff]  ;;  %v2463_v13 = vld [vmem:[#allocation2 + $0x248] sm:$0xff] }
0x1986   :  { %3035 = vmatmul.mubr.msk.bf16.vlgmr.msra.gmra.mrb[56].mxu1 %vm380_vm11, %v2257_v7  ;;  %v2468_v7 = vpack.c.bf16 %v2463_v13, %v2462_v6 }
0x1987   :  { %3048 = vmatprep.mubr.msk.bf16.mxu1 %vm3293_vm1, %v3292_v0 }
0x1a59   :  { %v2298_v11 = vpop.f32.mrb[56].mxu1 }
0x1a5a   :  { %v3036_v12 = vpop.f32.mrb[57].mxu1 }
0x1a5b   :  { %v2301_v14 = vpop.f32.mrb[58].mxu1 }
0x1a5c   :  { %v2305_v15 = vpack.c.bf16 %v2301_v14, %v2298_v11  ;;  %v3037_v20 = vpop.f32.mrb[59].mxu1 }
0x1a5e   :  { %3041 = vmatmul.mubr.msk.bf16.vlgmr.msra.gmra.mrb[56].mxu0 %vm292_vm5, %v2305_v15 }
0x1a5f   :  { %3060 = vmatprep.mubr.msk.bf16.mxu0 %vm3293_vm1, %v3292_v0  ;;  %3053 = vmatpush3.bf16.msra.mxu0 %v2465_v42 }
0x1a60   :  { %3054 = vmatprep.subr.bf16.mxu0 %v3292_v0 }
0x1a63   :  { %3055 = vmatpush3.bf16.msra.mxu0 %v2466_v44 }
0x1a64   :  { %3056 = vmatprep.subr.bf16.mxu0 %v3292_v0 }
0x1a67   :  { %3057 = vmatpush3.bf16.msra.mxu0 %v2467_v3 }
0x1a68   :  { %3058 = vmatprep.subr.bf16.mxu0 %v3292_v0 }
0x1a6b   :  { %3059 = vmatpush3.bf16.msra.mxu0 %v2468_v7 }
0x1b31   :  { %v2347_v16 = vpop.f32.mrb[56].mxu0 }
0x1b32   :  { %v2354_v5 = vadd.f32 %v2347_v16, %v2142_v55  ;;  %v3042_v17 = vpop.f32.mrb[57].mxu0 }
0x1b33   :  { %v2350_v29 = vpop.f32.mrb[58].mxu0  ;;  %v2709_v17 = vld [vmem:[#allocation2 + $0x250] ss:$0 sm:$0xff] }
0x1b34   :  { %v2355_v18 = vadd.f32 %v2350_v29, %v2143_v58  ;;  %v3043_v21 = vpop.f32.mrb[59].mxu0  ;;  %v2356_v30 = vadd.f32 %v2354_v5, %v3531_v53 }
0x1b36   :  { %v2360_v19 = vsel %vm133_vm4, %v2356_v30, 0.0  ;;  %v2357_v22 = vadd.f32 %v2355_v18, %v3533_v54  ;;  %v2399_v54 = vld [vmem:[#allocation2 + $0x1f0] sm:$0xff] }
0x1b37   :  { %2361 = vadd.xlane.f32.xlu1 %v2360_v19  ;;  %v2403_v35 = vpack.c.bf16 %v2399_v54, %v2398_v50 }
0x1b38   :  { %v2363_v23 = vsel %vm133_vm4, %v2357_v22, 0.0 }
0x1b39   :  { %3045 = vmatpush3.bf16.msra.mxu1 %v2403_v35 }
0x1b3a   :  { %3046 = vmatprep.subr.bf16.mxu1 %v3292_v0 }
0x1b3b   :  { %2364 = vadd.xlane.f32.xlu1 %v2363_v23 }
0x1b3d   :  { %3047 = vmatpush3.bf16.msra.mxu1 %v2404_v61  ;;  %v2566_v61 = vpack.c.bf16 %v2562_v37, %v2561_v36 }
0x1b3e   :  { %3064 = vmatprep.subr.bf16.mxu1 %v3292_v0 }
0x1bc4   :  { %v2362_v24 = vpop.xlane.xlu1 %2361 }
0x1bc5   :  { %v2366_v25 = vmul.f32 0.03125, %v2362_v24 }
0x1bc7   :  { %v2368_v26 = vsub.f32 %v2356_v30, %v2366_v25 }
0x1bc8   :  { %v2365_v27 = vpop.xlane.xlu1 %2364 }
0x1bc9   :  { %v2367_v28 = vmul.f32 0.03125, %v2365_v27  ;;  %v2370_v31 = vmul.f32 %v2368_v26, %v2368_v26 }
0x1bcb   :  { %v2369_v32 = vsub.f32 %v2357_v22, %v2367_v28  ;;  %v2372_v33 = vsel %vm133_vm4, %v2370_v31, 0.0 }
0x1bcc   :  { %2373 = vadd.xlane.f32.xlu1 %v2372_v33 }
0x1bcd   :  { %v2371_v34 = vmul.f32 %v2369_v32, %v2369_v32 }
0x1bcf   :  { %v2375_v53 = vsel %vm133_vm4, %v2371_v34, 0.0 }
0x1bd0   :  { %2376 = vadd.xlane.f32.xlu1 %v2375_v53 }
0x1c59   :  { %v2374_v45 = vpop.xlane.xlu1 %2373 }
0x1c5a   :  { %v2378_v46 = vmul.f32 0.03125, %v2374_v45 }
0x1c5c   :  { %v2380_v47 = vadd.f32 1e-05, %v2378_v46 }
0x1c5d   :  { %v2377_v41 = vpop.xlane.xlu1 %2376 }
0x1c5e   :  { %3233 = vrsqrt.f32 %v2380_v47  ;;  %v2379_v60 = vmul.f32 0.03125, %v2377_v41 }
0x1c60   :  { %v2381_v48 = vadd.f32 1e-05, %v2379_v60 }
0x1c62   :  { %3235 = vrsqrt.f32 %v2381_v48  ;;  %v2711_v48 = vld [vmem:[#allocation2 + $0x268] ss:$0 sm:$0xff] }
0x1c68   :  { %v3234_v49 = vpop.eup %3233 }
0x1c69   :  { %v2384_v4 = vmul.f32 %v3234_v49, %v2368_v26 }
0x1c6b   :  { %v2390_v55 = vmul.f32 %v2705_v2, %v2384_v4 }
0x1c6c   :  { %v3236_v51 = vpop.eup %3235 }
0x1c6d   :  { %v2385_v56 = vmul.f32 %v3236_v51, %v2369_v32  ;;  %v2396_v59 = vadd.f32 %v2706_v57, %v2390_v55  ;;  %v2712_v51 = vld [vmem:[#allocation2 + $0x270] ss:$0 sm:$0xff] }
0x1c6f   :  { %v2391_v58 = vmul.f32 %v2705_v2, %v2385_v56 }
0x1c71   :  { %v2397_v62 = vadd.f32 %v2706_v57, %v2391_v58 }
0x1c73   :  { %v2402_v63 = vpack.c.bf16 %v2397_v62, %v2396_v59 }
0x1c75   :  { %3049 = vmatmul.mubr.msk.bf16.vlgmr.msra.gmra.mrb[60].mxu1 %vm133_vm4, %v2402_v63 }
0x1c76   :  { %3068 = vmatprep.mubr.msk.bf16.mxu1 %vm3293_vm1, %v3292_v0  ;;  %3065 = vmatpush3.bf16.msra.mxu1 %v2566_v61 }
0x1c77   :  { %3066 = vmatprep.subr.bf16.mxu1 %v3292_v0 }
0x1c7a   :  { %3067 = vmatpush3.bf16.msra.mxu1 %v2567_v40 }
0x1d48   :  { %v2447_v9 = vpop.f32.mrb[60].mxu1 }
0x1d49   :  { %v2448_v10 = vadd.f32 %v2707_v8, %v2447_v9  ;;  %v3050_v11 = vpop.f32.mrb[61].mxu1 }
0x1d4a   :  { %v2450_v12 = vpop.f32.mrb[62].mxu1 }
0x1d4b   :  { %v2451_v14 = vadd.f32 %v2707_v8, %v2450_v12  ;;  %v3051_v15 = vpop.f32.mrb[63].mxu1  ;;  %v2454_v20 = vmax.f32 %v2448_v10, 0.0 }
0x1d4d   :  { %v2455_v16 = vmax.f32 %v2451_v14, 0.0 }
0x1d4f   :  { %v2464_v5 = vpack.c.bf16 %v2455_v16, %v2454_v20 }
0x1d51   :  { %3061 = vmatmul.mubr.msk.bf16.vlgmr.msra.gmra.mrb[60].mxu0 %vm1256_vm12, %v2464_v5 }
0x1e24   :  { %v2511_v29 = vpop.f32.mrb[60].mxu0 }
0x1e25   :  { %v2512_v18 = vadd.f32 %v2709_v17, %v2511_v29  ;;  %v3062_v21 = vpop.f32.mrb[61].mxu0 }
0x1e26   :  { %v2514_v30 = vpop.f32.mrb[62].mxu0 }
0x1e27   :  { %v2515_v19 = vadd.f32 %v2709_v17, %v2514_v30  ;;  %v3063_v22 = vpop.f32.mrb[63].mxu0  ;;  %v2518_v23 = vadd.f32 %v2512_v18, %v2396_v59  ;;  %v2713_v59 = vld [vmem:[#allocation2 + $0x298] ss:$0 sm:$0xff] }
0x1e29   :  { %v2522_v24 = vsel %vm133_vm4, %v2518_v23, 0.0  ;;  %v2519_v25 = vadd.f32 %v2515_v19, %v2397_v62 }
0x1e2a   :  { %2523 = vadd.xlane.f32.xlu1 %v2522_v24 }
0x1e2b   :  { %v2525_v26 = vsel %vm133_vm4, %v2519_v25, 0.0 }
0x1e2e   :  { %2526 = vadd.xlane.f32.xlu1 %v2525_v26 }
0x1eb7   :  { %v2524_v27 = vpop.xlane.xlu1 %2523 }
0x1eb8   :  { %v2528_v28 = vmul.f32 0.03125, %v2524_v27 }
0x1eba   :  { %v2530_v31 = vsub.f32 %v2518_v23, %v2528_v28 }
0x1ebb   :  { %v2527_v32 = vpop.xlane.xlu1 %2526 }
0x1ebc   :  { %v2529_v33 = vmul.f32 0.03125, %v2527_v32  ;;  %v2532_v34 = vmul.f32 %v2530_v31, %v2530_v31 }
0x1ebe   :  { %v2531_v53 = vsub.f32 %v2519_v25, %v2529_v33  ;;  %v2534_v50 = vsel %vm133_vm4, %v2532_v34, 0.0 }
0x1ebf   :  { %2535 = vadd.xlane.f32.xlu0 %v2534_v50 }
0x1ec0   :  { %v2533_v54 = vmul.f32 %v2531_v53, %v2531_v53 }
0x1ec2   :  { %v2537_v35 = vsel %vm133_vm4, %v2533_v54, 0.0 }
0x1ec3   :  { %2538 = vadd.xlane.f32.xlu1 %v2537_v35 }
0x1f4c   :  { %v2536_v42 = vpop.xlane.xlu0 %2535 }
0x1f4d   :  { %v2540_v43 = vmul.f32 0.03125, %v2536_v42 }
0x1f4f   :  { %v2542_v44 = vadd.f32 1e-05, %v2540_v43 }
0x1f50   :  { %v2539_v45 = vpop.xlane.xlu1 %2538 }
0x1f51   :  { %3237 = vrsqrt.f32 %v2542_v44  ;;  %v2541_v46 = vmul.f32 0.03125, %v2539_v45 }
0x1f53   :  { %v2543_v47 = vadd.f32 1e-05, %v2541_v46 }
0x1f55   :  { %3239 = vrsqrt.f32 %v2543_v47 }
0x1f5b   :  { %v3238_v41 = vpop.eup %3237 }
0x1f5c   :  { %v2546_v60 = vmul.f32 %v3238_v41, %v2530_v31 }
0x1f5e   :  { %v2552_v4 = vmul.f32 %v2711_v48, %v2546_v60 }
0x1f5f   :  { %v3240_v49 = vpop.eup %3239 }
0x1f60   :  { %v2547_v2 = vmul.f32 %v3240_v49, %v2531_v53  ;;  %v2558_v56 = vadd.f32 %v2712_v51, %v2552_v4 }
0x1f62   :  { %v2553_v55 = vmul.f32 %v2711_v48, %v2547_v2 }
0x1f64   :  { %v2559_v57 = vadd.f32 %v2712_v51, %v2553_v55 }
0x1f66   :  { %v2560_v0 = vmax.f32 %v2558_v56, %v2559_v57 }
0x1f68   :  { %v2565_v58 = vpack.c.bf16 %v2560_v0, %v2560_v0 }
0x1f6a   :  { %3069 = vmatmul.mubr.msk.bf16.vlgmr.msra.gmra.mrb[64].mxu1 %vm133_vm4, %v2565_v58 }
0x203d   :  { %v2610_v62 = vpop.f32.mrb[64].mxu1 }
0x203e   :  { %v2611_v63 = vadd.f32 %v2713_v59, %v2610_v62  ;;  %v3070_v52 = vpop.f32.mrb[65].mxu1 }
0x203f   :  { %v2613_v1 = vpop.f32.mrb[66].mxu1 }
0x2040   :  { %v3071_v3 = vpop.f32.mrb[67].mxu1  ;;  %2617 = vst.msk [vmem:[#allocation5] sm:$0xff] %vm2616_vm13, %v2611_v63 }
0x2041   :  { %3274 = shalt.err (!%p3271_p12)
}
0x2042   :  { %s3275_s5 = scalar_lea.hbm %s3714_s2, 128 }
0x2043   :  { %p3276_p13 = scmp.ne.s32.totalorder %s3714_s2, %s3275_s5  ;;  %p3279_p0 = scmp.lt.u32.totalorder %s3275_s5, %s3714_s2 }
0x2045   :  { %p3281_p1 = pnand %p3279_p0, %p3276_p13 }
0x2047   :  { %3284 = shalt.err (!%p3281_p1)
}
0x2048   :  { %2627 = dma.vmem_to_hbm [thread:$0]  %s2625_s29, 128, %s3714_s2, [#allocation4]  }
0x2049   :  { %3287 = dma.done.wait [#allocation4], 128  }
0x204a   :  { %3288 = vsyncadd [#allocation4], 4294967168 }
0x204b   :  { %2631 = vsyncpa [#allocation3], 1 }
0x204c   :  { %2632 = vsyncpa [#allocation4], 1 }

</bundles_post_ra>
